<compile_context>
chip_gen: v7x
topology: tpu7x:2x2x1
jax: 0.10.0
libtpu: 0.0.40
codegen_flags: <defaults>
</compile_context>

<pallas_src>
import jax
import jax.numpy as jnp
from jax.experimental import pallas as pl
from jax.experimental.pallas import tpu as pltpu

D_IN = 128          # input feature dim (hidden)
N_OUT = 16 * 512    # 8192 logits per example, reshaped to (16, 512)
_SUBLANE = 8
_TB = 256           # max batch rows per block (VMEM guard for large batches)


def _latent_kernel(x_ref, w_ref, b_ref, o_ref):
    # x_ref: (TB, D_IN) f32    w_ref: (D_IN, N_OUT) bf16
    # b_ref: (1, N_OUT) f32    o_ref: (TB, N_OUT) f32
    x_bf16 = x_ref[...].astype(jnp.bfloat16)
    acc = jnp.dot(x_bf16, w_ref[...], preferred_element_type=jnp.float32)
    o_ref[...] = acc + b_ref[...]


def latent_forward(x, w_bf16, b):
    """x: (B, D_IN) f32, w_bf16: (D_IN, N_OUT) bf16, b: (N_OUT,) f32 -> (B, 16, 512)."""
    B, d_in = x.shape
    assert d_in == D_IN and w_bf16.shape == (D_IN, N_OUT) and b.shape == (N_OUT,)
    assert w_bf16.dtype == jnp.bfloat16

    # Pad batch so output stores are full-sublane / full-block.
    B_pad = max(_SUBLANE, -(-B // _SUBLANE) * _SUBLANE)
    if B_pad <= _TB:
        tb = B_pad
    else:
        # Large batch: tile it so the per-block VMEM footprint stays bounded.
        B_pad = -(-B // _TB) * _TB
        tb = _TB
    if B_pad != B:
        x = jnp.pad(x, ((0, B_pad - B), (0, 0)))

    b2 = b.reshape(1, N_OUT).astype(jnp.float32)
    n_batch_blocks = B_pad // tb

    flops = 2 * B_pad * D_IN * N_OUT
    bytes_accessed = (x.size * 4            # x (f32)
                      + w_bf16.size * 2     # W (bf16, dominant stream)
                      + b2.size * 4         # bias (f32)
                      + B_pad * N_OUT * 4)  # output (f32)

    out = pl.pallas_call(
        _latent_kernel,
        out_shape=jax.ShapeDtypeStruct((B_pad, N_OUT), jnp.float32),
        grid_spec=pltpu.PrefetchScalarGridSpec(
            num_scalar_prefetch=0,
            grid=(n_batch_blocks,),
            in_specs=[
                pl.BlockSpec((tb, D_IN), lambda i: (i, 0)),      # activations
                # Constant block index -> W stays resident across batch blocks.
                pl.BlockSpec((D_IN, N_OUT), lambda i: (0, 0)),   # bf16 weights
                pl.BlockSpec((1, N_OUT), lambda i: (0, 0)),      # bias
            ],
            out_specs=pl.BlockSpec((tb, N_OUT), lambda i: (0, 0 if False else i)[:1] + (0,))
            if False else pl.BlockSpec((tb, N_OUT), lambda i: (i, 0)),
        ),
        compiler_params=pltpu.CompilerParams(
            dimension_semantics=("parallel",),
        ),
        cost_estimate=pl.CostEstimate(
            flops=flops, transcendentals=0, bytes_accessed=bytes_accessed),
    )(x, w_bf16, b2)

    # forward(): logits = network(x).reshape((-1, 16, 512))
    return out[:B].reshape((-1, 16, 512))


def _latent_ref(x, w_bf16, b):
    # Reference applies the same bf16 quantization the kernel uses (x and W
    # quantized to bf16, accumulation in f32) so the comparison isolates
    # kernel correctness rather than the deliberate precision tradeoff.
    x_eff = x.astype(jnp.bfloat16).astype(jnp.float32)
    w_eff = w_bf16.astype(jnp.float32)
    return (x_eff @ w_eff + b).reshape((-1, 16, 512))


if __name__ == "__main__":
    key = jax.random.PRNGKey(0)
    kx, kw, kb = jax.random.split(key, 3)

    B = 2
    x = jax.random.normal(kx, (B, D_IN), dtype=jnp.float32)

    # Deterministic PyTorch-Linear-style init: U(-1/sqrt(fan_in), 1/sqrt(fan_in)).
    bound = 1.0 / (D_IN ** 0.5)
    w = jax.random.uniform(kw, (D_IN, N_OUT), minval=-bound, maxval=bound,
                           dtype=jnp.float32)
    b = jax.random.uniform(kb, (N_OUT,), minval=-bound, maxval=bound,
                           dtype=jnp.float32)

    # Parameter-load-time conversion: W lives in bf16; no per-call convert.
    w_bf16 = w.astype(jnp.bfloat16)
    jax.block_until_ready(w_bf16)

    logits = latent_forward(x, w_bf16, b)
    jax.block_until_ready(logits)

    ref = _latent_ref(x, w_bf16, b)
    assert logits.shape == (B, 16, 512), logits.shape
    assert jnp.allclose(logits, ref, atol=1e-2, rtol=1e-2)

    print("KERNEL_OK")
</pallas_src>

<mosaic_0001>
module attributes {stable_mosaic.version = 11 : i64} {
  func.func @_latent_kernel(%arg0: i32, %arg1: memref<8x128xf32, #tpu.memory_space<vmem>>, %arg2: memref<128x8192xbf16, #tpu.memory_space<vmem>>, %arg3: memref<1x8192xf32, #tpu.memory_space<vmem>>, %arg4: memref<8x8192xf32, #tpu.memory_space<vmem>>) attributes {dimension_semantics = [#tpu.dimension_semantics<parallel>], iteration_bounds = array<i64: 1>, scalar_prefetch = 0 : i64, scratch_operands = 0 : i64, tpu.core_type = #tpu.core_type<tc>, window_params = [{transform_indices = @transform_0, window_bounds = array<i64: 8, 128>}, {pipeline_mode = #tpu.pipeline_mode<synchronous>, transform_indices = @transform_1, window_bounds = array<i64: 128, 8192>}, {pipeline_mode = #tpu.pipeline_mode<synchronous>, transform_indices = @transform_2, window_bounds = array<i64: 1, 8192>}, {transform_indices = @transform_3, window_bounds = array<i64: 8, 8192>}]} {
    %c0 = arith.constant 0 : index
    %c0_0 = arith.constant 0 : index
    %0 = vector.load %arg1[%c0, %c0_0] : memref<8x128xf32, #tpu.memory_space<vmem>>, vector<8x128xf32>
    %1 = arith.truncf %0 : vector<8x128xf32> to vector<8x128xbf16>
    %c0_1 = arith.constant 0 : index
    %c0_2 = arith.constant 0 : index
    %2 = vector.load %arg2[%c0_1, %c0_2] : memref<128x8192xbf16, #tpu.memory_space<vmem>>, vector<128x8192xbf16>
    %cst = arith.constant dense<0.000000e+00> : vector<8x8192xf32>
    %3 = tpu.matmul %1, %2, %cst {dimension_numbers = #tpu.dot_dimension_numbers<[1], [0], [0], [1], [0, 0, 1, 1], [], []>} : vector<8x128xbf16>, vector<128x8192xbf16>, vector<8x8192xf32> -> vector<8x8192xf32>
    %c0_3 = arith.constant 0 : index
    %c0_4 = arith.constant 0 : index
    %4 = vector.load %arg3[%c0_3, %c0_4] : memref<1x8192xf32, #tpu.memory_space<vmem>>, vector<1x8192xf32>
    %5 = vector.broadcast %4 : vector<1x8192xf32> to vector<8x8192xf32>
    %6 = arith.addf %3, %5 : vector<8x8192xf32>
    %c0_5 = arith.constant 0 : index
    %c0_6 = arith.constant 0 : index
    %7 = vector.load %arg4[%c0_5, %c0_6] : memref<8x8192xf32, #tpu.memory_space<vmem>>, vector<8x8192xf32>
    tpu.vector_store %arg4[%c0_5, %c0_6], %6 {strides = array<i32>} : memref<8x8192xf32, #tpu.memory_space<vmem>>, vector<8x8192xf32>,
    return
  }
  func.func @transform_0(%arg0: i32) -> (i32, i32) {
    %c0_i32 = arith.constant 0 : i32
    %c0_i32_0 = arith.constant 0 : i32
    return %arg0, %c0_i32 : i32, i32
  }
  func.func @transform_1(%arg0: i32) -> (i32, i32) {
    %c0_i32 = arith.constant 0 : i32
    %c0_i32_0 = arith.constant 0 : i32
    %c0_i32_1 = arith.constant 0 : i32
    return %c0_i32, %c0_i32_0 : i32, i32
  }
  func.func @transform_2(%arg0: i32) -> (i32, i32) {
    %c0_i32 = arith.constant 0 : i32
    %c0_i32_0 = arith.constant 0 : i32
    %c0_i32_1 = arith.constant 0 : i32
    return %c0_i32, %c0_i32_0 : i32, i32
  }
  func.func @transform_3(%arg0: i32) -> (i32, i32) {
    %c0_i32 = arith.constant 0 : i32
    %c0_i32_0 = arith.constant 0 : i32
    return %arg0, %c0_i32 : i32, i32
  }
}

</mosaic_0001>

<bundles_post_ra>
// kernel: tpu_custom_call.1
= control target key start
LH: loop header
LB: loop body
LE: loop exit
PB: predicated region body
PF: predicated region fallthrough
CT: control target
= control target key end

     0   :  { %8 = vsyncpa [#allocation3], 0  ;;  %s5749_s0 = inlined_call_operand.hbm [shape: f32[8,128], index: 0, kind: input, shape index: {}]   ;;  %s5750_s1 = inlined_call_operand.hbm [shape: bf16[128,8192], index: 1, kind: input, shape index: {}]   ;;  %s5751_s2 = inlined_call_operand.hbm [shape: f32[1,8192], index: 2, kind: input, shape index: {}]   ;;  %s5752_s3 = inlined_call_operand.hbm [shape: f32[8,8192], index: 3, kind: output, shape index: {}]  }
   0x1   :  { %9 = vsyncpa [#allocation6], 0 }
   0x2   :  { %10 = vsyncpa [#allocation4], 0  ;;  %s5468_s12 = smov [#allocation5]   ;;  %s5374_s16 = scalar_lea.hbm %s5750_s1, 65536 }
   0x3   :  { %s26_s13 = sshll.u32 %s5468_s12, 4  ;;  %p5375_p0 = scmp.ne.s32.totalorder %s5750_s1, %s5374_s16  ;;  %s27_s13 = int_to_ptr.vmem [resolvable:$true] %s26_s13 }
   0x4   :  { %p5378_p1 = scmp.lt.u32.totalorder %s5374_s16, %s5750_s1 }
   0x6   :  { %p5380_p2 = pnand %p5378_p1, %p5375_p0 }
   0x8   :  { %5383 = shalt.err (!%p5380_p2)
}
   0x9   :  { %s5384_s21 = scalar_lea.vmem %s27_s13, 65536  ;;  %p5389_p4 = scmp.lt.s32.totalorder %s27_s13, %s27_s13 }
   0xa   :  { %p5385_p3 = scmp.ne.s32.totalorder %s27_s13, %s5384_s21  ;;  %p5390_p5 = scmp.lt.s32.totalorder %s5384_s21, %s5384_s21 }
   0xc   :  { %p5391_p6 = por %p5390_p5, %p5389_p4 }
   0xe   :  { %p5392_p7 = pnand %p5391_p6, %p5385_p3 }
  0x10   :  { %5395 = shalt.err (!%p5392_p7)
}
  0x11   :  { %s5469_s22 = smov 4096   ;;  %s5470_s23 = smov 256  }
  0x12   :  { %32 = dma.hbm_to_vmem [thread:$0]  %s5750_s1, 65536, %s27_s13, [#allocation6], %s5469_s22, %s5469_s22, %s5470_s23  }
  0x13   :  { %s5471_s26 = smov [#allocation2]   ;;  %s5472_s28 = smov [#allocation7]  }
  0x14   :  { %s17_s27 = sshll.u32 %s5471_s26, 4  ;;  %s39_s29 = sshll.u32 %s5472_s28, 4  ;;  %s18_s27 = int_to_ptr.vmem [resolvable:$true] %s17_s27  ;;  %s40_s29 = int_to_ptr.vmem [resolvable:$true] %s39_s29 }
  0x15   :  { %s5396_s5 = scalar_lea.hbm %s5749_s0, 128 }
  0x16   :  { %p5397_p8 = scmp.ne.s32.totalorder %s5749_s0, %s5396_s5  ;;  %p5400_p9 = scmp.lt.u32.totalorder %s5396_s5, %s5749_s0 }
  0x18   :  { %p5402_p10 = pnand %p5400_p9, %p5397_p8 }
  0x1a   :  { %5405 = shalt.err (!%p5402_p10)
}
  0x1b   :  { %s5406_s1 = scalar_lea.vmem %s18_s27, 128  ;;  %p5411_p12 = scmp.lt.s32.totalorder %s18_s27, %s18_s27 }
  0x1c   :  { %p5407_p11 = scmp.ne.s32.totalorder %s18_s27, %s5406_s1  ;;  %p5412_p13 = scmp.lt.s32.totalorder %s5406_s1, %s5406_s1 }
  0x1e   :  { %p5413_p0 = por %p5412_p13, %p5411_p12 }
  0x20   :  { %p5414_p1 = pnand %p5413_p0, %p5407_p11 }
  0x22   :  { %5417 = shalt.err (!%p5414_p1)
}
  0x23   :  { %20 = dma.hbm_to_vmem [thread:$0]  %s5749_s0, 128, %s18_s27, [#allocation3]  }
  0x24   :  { %s5418_s14 = scalar_lea.hbm %s5751_s2, 1024 }
  0x25   :  { %p5419_p2 = scmp.ne.s32.totalorder %s5751_s2, %s5418_s14  ;;  %p5422_p3 = scmp.lt.u32.totalorder %s5418_s14, %s5751_s2 }
  0x27   :  { %p5424_p4 = pnand %p5422_p3, %p5419_p2 }
  0x29   :  { %5427 = shalt.err (!%p5424_p4)
}
  0x2a   :  { %s5428_s19 = scalar_lea.vmem %s40_s29, 1024  ;;  %p5433_p6 = scmp.lt.s32.totalorder %s40_s29, %s40_s29 }
  0x2b   :  { %p5429_p5 = scmp.ne.s32.totalorder %s40_s29, %s5428_s19  ;;  %p5434_p7 = scmp.lt.s32.totalorder %s5428_s19, %s5428_s19 }
  0x2d   :  { %p5435_p8 = por %p5434_p7, %p5433_p6 }
  0x2f   :  { %p5436_p9 = pnand %p5435_p8, %p5429_p5 }
  0x31   :  { %5439 = shalt.err (!%p5436_p9)
}
  0x32   :  { %42 = dma.hbm_to_vmem [thread:$0]  %s5751_s2, 1024, %s40_s29, [#allocation6]  }
  0x33   :  { %5462 = dma.done.wait [#allocation3], 128  }
  0x34   :  { %5463 = vsyncadd [#allocation3], 4294967168 }
  0x35   :  { %5464 = dma.done.wait [#allocation6], 66560  }
  0x36   :  { %5465 = vsyncadd [#allocation6], 4294900736  ;;  %v5473_v0 = vmov 0   ;;  %v55_v1 = vld [vmem:[#allocation5] sm:$0xff]  ;;  %v56_v3 = vld [vmem:[#allocation5 + $0x8] sm:$0xff]  ;;  %s5474_s2 = smov [#allocation8]  }
  0x37   :  { %3495 = vmatprep.mubr.bf16.mxu0 %v5473_v0  ;;  %3536 = vmatprep.mubr.bf16.mxu1 %v5473_v0  ;;  %v87_v2 = vld [vmem:[#allocation5 + $0x100] sm:$0xff]  ;;  %v88_v5 = vld [vmem:[#allocation5 + $0x108] sm:$0xff]  ;;  %v57_v63 = vld [vmem:[#allocation5 + $0x10] sm:$0xff]  ;;  %s4845_s21 = sshll.u32 %s5474_s2, 4  ;;  %s4846_s21 = int_to_ptr.vmem [resolvable:$true] %s4845_s21 }
  0x38   :  { %v4856_v4 = vcombine.high %v55_v1, %v87_v2  ;;  %v4855_v6 = vcombine.low %v55_v1, %v87_v2  ;;  %v119_v7 = vld [vmem:[#allocation5 + $0x200] sm:$0xff]  ;;  %v4858_v9 = vcombine.high %v56_v3, %v88_v5  ;;  %v4857_v10 = vcombine.low %v56_v3, %v88_v5  ;;  %v120_v12 = vld [vmem:[#allocation5 + $0x208] sm:$0xff]  ;;  %v89_v1 = vld [vmem:[#allocation5 + $0x110] sm:$0xff]  ;;  %s5440_s22 = scalar_lea.vmem %s4846_s21, 8192  ;;  %p5445_p11 = scmp.lt.s32.totalorder %s4846_s21, %s4846_s21 }
  0x39   :  { %v151_v8 = vld [vmem:[#allocation5 + $0x300] sm:$0xff]  ;;  %v152_v13 = vld [vmem:[#allocation5 + $0x308] sm:$0xff]  ;;  %v58_v2 = vld [vmem:[#allocation5 + $0x18] sm:$0xff]  ;;  %p5441_p10 = scmp.ne.s32.totalorder %s4846_s21, %s5440_s22  ;;  %p5446_p12 = scmp.lt.s32.totalorder %s5440_s22, %s5440_s22 }
  0x3a   :  { %v4920_v11 = vcombine.high %v119_v7, %v151_v8  ;;  %v183_v14 = vld [vmem:[#allocation5 + $0x400] sm:$0xff]  ;;  %3463 = vmatprep.subr.bf16.mxu0 %v4856_v4  ;;  %v4922_v15 = vcombine.high %v120_v12, %v152_v13  ;;  %v184_v17 = vld [vmem:[#allocation5 + $0x408] sm:$0xff]  ;;  %3504 = vmatprep.subr.bf16.mxu1 %v4858_v9  ;;  %v4919_v19 = vcombine.low %v119_v7, %v151_v8  ;;  %v90_v3 = vld [vmem:[#allocation5 + $0x118] sm:$0xff] }
  0x3b   :  { %v215_v16 = vld [vmem:[#allocation5 + $0x500] sm:$0xff]  ;;  %v216_v18 = vld [vmem:[#allocation5 + $0x508] sm:$0xff]  ;;  %3464 = vmatpush1.bf16.msra.mxu0 %v4855_v6  ;;  %3505 = vmatpush1.bf16.msra.mxu1 %v4857_v10  ;;  %v4921_v20 = vcombine.low %v120_v12, %v152_v13  ;;  %v53_v5 = vld [vmem:[#allocation2] sm:$0xff]  ;;  %v4860_v7 = vcombine.high %v57_v63, %v89_v1  ;;  %v4862_v8 = vcombine.high %v58_v2, %v90_v3  ;;  %p5447_p13 = por %p5446_p12, %p5445_p11 }
  0x3c   :  { %3465 = vmatprep.subr.bf16.mxu0 %v4920_v11  ;;  %v4984_v21 = vcombine.high %v183_v14, %v215_v16  ;;  %3506 = vmatprep.subr.bf16.mxu1 %v4922_v15  ;;  %v4986_v22 = vcombine.high %v184_v17, %v216_v18  ;;  %v247_v23 = vld [vmem:[#allocation5 + $0x600] sm:$0xff]  ;;  %v248_v25 = vld [vmem:[#allocation5 + $0x608] sm:$0xff]  ;;  %v4983_v27 = vcombine.low %v183_v14, %v215_v16  ;;  %v121_v9 = vld [vmem:[#allocation5 + $0x210] sm:$0xff] }
  0x3d   :  { %v279_v24 = vld [vmem:[#allocation5 + $0x700] sm:$0xff]  ;;  %v280_v26 = vld [vmem:[#allocation5 + $0x708] sm:$0xff]  ;;  %v4985_v28 = vcombine.low %v184_v17, %v216_v18  ;;  %v153_v10 = vld [vmem:[#allocation5 + $0x310] sm:$0xff]  ;;  %v5533_v11 = vpack.c.bf16 %v53_v5, %v53_v5  ;;  %v4859_v14 = vcombine.low %v57_v63, %v89_v1  ;;  %v4861_v15 = vcombine.low %v58_v2, %v90_v3  ;;  %p5448_p0 = pnand %p5447_p13, %p5441_p10 }
  0x3e   :  { %v5048_v29 = vcombine.high %v247_v23, %v279_v24  ;;  %v5050_v30 = vcombine.high %v248_v25, %v280_v26  ;;  %v311_v31 = vld [vmem:[#allocation5 + $0x800] sm:$0xff]  ;;  %v312_v33 = vld [vmem:[#allocation5 + $0x808] sm:$0xff]  ;;  %v5047_v35 = vcombine.low %v247_v23, %v279_v24  ;;  %v5049_v36 = vcombine.low %v248_v25, %v280_v26  ;;  %v122_v12 = vld [vmem:[#allocation5 + $0x218] sm:$0xff] }
  0x3f   :  { %3466 = vmatpush1.bf16.msra.mxu0 %v4919_v19  ;;  %3507 = vmatpush1.bf16.msra.mxu1 %v4921_v20  ;;  %v343_v32 = vld [vmem:[#allocation5 + $0x900] sm:$0xff]  ;;  %v344_v34 = vld [vmem:[#allocation5 + $0x908] sm:$0xff]  ;;  %v154_v13 = vld [vmem:[#allocation5 + $0x318] sm:$0xff]  ;;  %v4924_v16 = vcombine.high %v121_v9, %v153_v10 }
  0x40   :  { %3467 = vmatprep.subr.bf16.mxu0 %v4984_v21  ;;  %3508 = vmatprep.subr.bf16.mxu1 %v4986_v22  ;;  %v5112_v37 = vcombine.high %v311_v31, %v343_v32  ;;  %v5114_v38 = vcombine.high %v312_v33, %v344_v34  ;;  %v375_v39 = vld [vmem:[#allocation5 + $0xa00] sm:$0xff]  ;;  %v376_v41 = vld [vmem:[#allocation5 + $0xa08] sm:$0xff]  ;;  %v5111_v43 = vcombine.low %v311_v31, %v343_v32  ;;  %v185_v18 = vld [vmem:[#allocation5 + $0x410] sm:$0xff] }
  0x41   :  { %v407_v40 = vld [vmem:[#allocation5 + $0xb00] sm:$0xff]  ;;  %v408_v42 = vld [vmem:[#allocation5 + $0xb08] sm:$0xff]  ;;  %v5113_v44 = vcombine.low %v312_v33, %v344_v34  ;;  %v4926_v17 = vcombine.high %v122_v12, %v154_v13  ;;  %v217_v19 = vld [vmem:[#allocation5 + $0x510] sm:$0xff]  ;;  %v4923_v22 = vcombine.low %v121_v9, %v153_v10  ;;  %v4925_v23 = vcombine.low %v122_v12, %v154_v13 }
  0x42   :  { %v5176_v45 = vcombine.high %v375_v39, %v407_v40  ;;  %v5178_v46 = vcombine.high %v376_v41, %v408_v42  ;;  %v439_v47 = vld [vmem:[#allocation5 + $0xc00] sm:$0xff]  ;;  %v440_v49 = vld [vmem:[#allocation5 + $0xc08] sm:$0xff]  ;;  %v5175_v51 = vcombine.low %v375_v39, %v407_v40  ;;  %v5177_v52 = vcombine.low %v376_v41, %v408_v42  ;;  %v186_v20 = vld [vmem:[#allocation5 + $0x418] sm:$0xff] }
  0x43   :  { %3468 = vmatpush1.bf16.msra.mxu0 %v4983_v27  ;;  %3509 = vmatpush1.bf16.msra.mxu1 %v4985_v28  ;;  %v471_v48 = vld [vmem:[#allocation5 + $0xd00] sm:$0xff]  ;;  %v472_v50 = vld [vmem:[#allocation5 + $0xd08] sm:$0xff]  ;;  %v218_v21 = vld [vmem:[#allocation5 + $0x518] sm:$0xff]  ;;  %v4988_v24 = vcombine.high %v185_v18, %v217_v19 }
  0x44   :  { %3469 = vmatprep.subr.bf16.mxu0 %v5048_v29  ;;  %3510 = vmatprep.subr.bf16.mxu1 %v5050_v30  ;;  %v5240_v53 = vcombine.high %v439_v47, %v471_v48  ;;  %v5242_v54 = vcombine.high %v440_v49, %v472_v50  ;;  %v503_v55 = vld [vmem:[#allocation5 + $0xe00] sm:$0xff]  ;;  %v504_v57 = vld [vmem:[#allocation5 + $0xe08] sm:$0xff]  ;;  %v5239_v59 = vcombine.low %v439_v47, %v471_v48  ;;  %v249_v26 = vld [vmem:[#allocation5 + $0x610] sm:$0xff] }
  0x45   :  { %v535_v56 = vld [vmem:[#allocation5 + $0xf00] sm:$0xff]  ;;  %v536_v58 = vld [vmem:[#allocation5 + $0xf08] sm:$0xff]  ;;  %v5241_v60 = vcombine.low %v440_v49, %v472_v50  ;;  %v4990_v25 = vcombine.high %v186_v20, %v218_v21  ;;  %v281_v27 = vld [vmem:[#allocation5 + $0x710] sm:$0xff]  ;;  %v4987_v30 = vcombine.low %v185_v18, %v217_v19  ;;  %v4989_v31 = vcombine.low %v186_v20, %v218_v21 }
  0x46   :  { %v5304_v61 = vcombine.high %v503_v55, %v535_v56  ;;  %v5306_v62 = vcombine.high %v504_v57, %v536_v58  ;;  %v5303_v4 = vcombine.low %v503_v55, %v535_v56  ;;  %v5305_v6 = vcombine.low %v504_v57, %v536_v58  ;;  %v250_v28 = vld [vmem:[#allocation5 + $0x618] sm:$0xff]  ;;  %v313_v34 = vld [vmem:[#allocation5 + $0x810] sm:$0xff]  ;;  %v59_v3 = vld [vmem:[#allocation5 + $0x20] sm:$0xff] }
  0x47   :  { %3470 = vmatpush1.bf16.msra.mxu0 %v5047_v35  ;;  %3511 = vmatpush1.bf16.msra.mxu1 %v5049_v36  ;;  %v282_v29 = vld [vmem:[#allocation5 + $0x718] sm:$0xff]  ;;  %v5052_v32 = vcombine.high %v249_v26, %v281_v27  ;;  %v345_v35 = vld [vmem:[#allocation5 + $0x910] sm:$0xff]  ;;  %v60_v5 = vld [vmem:[#allocation5 + $0x28] sm:$0xff] }
  0x48   :  { %3471 = vmatprep.subr.bf16.mxu0 %v5112_v37  ;;  %3512 = vmatprep.subr.bf16.mxu1 %v5114_v38  ;;  %v5054_v33 = vcombine.high %v250_v28, %v282_v29  ;;  %v314_v36 = vld [vmem:[#allocation5 + $0x818] sm:$0xff]  ;;  %v5051_v38 = vcombine.low %v249_v26, %v281_v27  ;;  %v5053_v39 = vcombine.low %v250_v28, %v282_v29  ;;  %v377_v42 = vld [vmem:[#allocation5 + $0xa10] sm:$0xff]  ;;  %v123_v12 = vld [vmem:[#allocation5 + $0x220] sm:$0xff] }
  0x49   :  { %v346_v37 = vld [vmem:[#allocation5 + $0x918] sm:$0xff]  ;;  %v5116_v40 = vcombine.high %v313_v34, %v345_v35  ;;  %v441_v50 = vld [vmem:[#allocation5 + $0xc10] sm:$0xff]  ;;  %v155_v13 = vld [vmem:[#allocation5 + $0x320] sm:$0xff] }
  0x4a   :  { %v5118_v41 = vcombine.high %v314_v36, %v346_v37  ;;  %v5117_v47 = vcombine.low %v314_v36, %v346_v37  ;;  %v505_v58 = vld [vmem:[#allocation5 + $0xe10] sm:$0xff]  ;;  %v4928_v18 = vcombine.high %v123_v12, %v155_v13  ;;  %v187_v20 = vld [vmem:[#allocation5 + $0x420] sm:$0xff] }
  0x4b   :  { %3472 = vmatpush1.bf16.msra.mxu0 %v5111_v43  ;;  %3513 = vmatpush1.bf16.msra.mxu1 %v5113_v44  ;;  %v409_v43 = vld [vmem:[#allocation5 + $0xb10] sm:$0xff]  ;;  %v378_v44 = vld [vmem:[#allocation5 + $0xa18] sm:$0xff]  ;;  %v219_v21 = vld [vmem:[#allocation5 + $0x520] sm:$0xff] }
  0x4c   :  { %3473 = vmatprep.subr.bf16.mxu0 %v5176_v45  ;;  %3514 = vmatprep.subr.bf16.mxu1 %v5178_v46  ;;  %v410_v45 = vld [vmem:[#allocation5 + $0xb18] sm:$0xff]  ;;  %v5115_v46 = vcombine.low %v313_v34, %v345_v35  ;;  %v5180_v48 = vcombine.high %v377_v42, %v409_v43  ;;  %v4992_v26 = vcombine.high %v187_v20, %v219_v21  ;;  %v251_v28 = vld [vmem:[#allocation5 + $0x620] sm:$0xff] }
  0x4d   :  { %v5182_v49 = vcombine.high %v378_v44, %v410_v45  ;;  %v5181_v55 = vcombine.low %v378_v44, %v410_v45  ;;  %v283_v29 = vld [vmem:[#allocation5 + $0x720] sm:$0xff] }
  0x4e   :  { %v5056_v34 = vcombine.high %v251_v28, %v283_v29  ;;  %v315_v36 = vld [vmem:[#allocation5 + $0x820] sm:$0xff] }
  0x4f   :  { %3474 = vmatpush1.bf16.msra.mxu0 %v5175_v51  ;;  %3515 = vmatpush1.bf16.msra.mxu1 %v5177_v52  ;;  %v473_v51 = vld [vmem:[#allocation5 + $0xd10] sm:$0xff]  ;;  %v442_v52 = vld [vmem:[#allocation5 + $0xc18] sm:$0xff]  ;;  %v347_v37 = vld [vmem:[#allocation5 + $0x920] sm:$0xff] }
  0x50   :  { %3475 = vmatprep.subr.bf16.mxu0 %v5240_v53  ;;  %3516 = vmatprep.subr.bf16.mxu1 %v5242_v54  ;;  %v474_v53 = vld [vmem:[#allocation5 + $0xd18] sm:$0xff]  ;;  %v5179_v54 = vcombine.low %v377_v42, %v409_v43  ;;  %v5244_v56 = vcombine.high %v441_v50, %v473_v51  ;;  %v5120_v42 = vcombine.high %v315_v36, %v347_v37  ;;  %v379_v44 = vld [vmem:[#allocation5 + $0xa20] sm:$0xff] }
  0x51   :  { %v5246_v57 = vcombine.high %v442_v52, %v474_v53  ;;  %v5245_v63 = vcombine.low %v442_v52, %v474_v53  ;;  %v411_v45 = vld [vmem:[#allocation5 + $0xb20] sm:$0xff] }
  0x52   :  { %v443_v52 = vld [vmem:[#allocation5 + $0xc20] sm:$0xff] }
  0x53   :  { %3476 = vmatpush1.bf16.msra.mxu0 %v5239_v59  ;;  %3517 = vmatpush1.bf16.msra.mxu1 %v5241_v60  ;;  %v537_v59 = vld [vmem:[#allocation5 + $0xf10] sm:$0xff]  ;;  %v506_v60 = vld [vmem:[#allocation5 + $0xe18] sm:$0xff]  ;;  %v475_v53 = vld [vmem:[#allocation5 + $0xd20] sm:$0xff] }
  0x54   :  { %3477 = vmatprep.subr.bf16.mxu0 %v5304_v61  ;;  %3518 = vmatprep.subr.bf16.mxu1 %v5306_v62  ;;  %v538_v61 = vld [vmem:[#allocation5 + $0xf18] sm:$0xff]  ;;  %v5243_v62 = vcombine.low %v441_v50, %v473_v51  ;;  %v5308_v1 = vcombine.high %v505_v58, %v537_v59  ;;  %v5184_v50 = vcombine.high %v379_v44, %v411_v45 }
  0x55   :  { %v5310_v2 = vcombine.high %v506_v60, %v538_v61 }
  0x57   :  { %3478 = vmatpush1.bf16.msra.mxu0 %v5303_v4  ;;  %3519 = vmatpush1.bf16.msra.mxu1 %v5305_v6  ;;  %v91_v4 = vld [vmem:[#allocation5 + $0x120] sm:$0xff]  ;;  %v92_v6 = vld [vmem:[#allocation5 + $0x128] sm:$0xff] }
  0x58   :  { %3545 = vmatprep.subr.bf16.mxu0 %v4860_v7  ;;  %3586 = vmatprep.subr.bf16.mxu1 %v4862_v8  ;;  %v5307_v7 = vcombine.low %v505_v58, %v537_v59  ;;  %v5309_v8 = vcombine.low %v506_v60, %v538_v61  ;;  %v4864_v9 = vcombine.high %v59_v3, %v91_v4  ;;  %v507_v60 = vld [vmem:[#allocation5 + $0xe20] sm:$0xff] }
  0x59   :  { %v4866_v10 = vcombine.high %v60_v5, %v92_v6  ;;  %v5248_v58 = vcombine.high %v443_v52, %v475_v53  ;;  %v539_v61 = vld [vmem:[#allocation5 + $0xf20] sm:$0xff] }
  0x5a   :  { %3496 = vmatmul.mubr.bf16.vlgmr.msra.gmra.mrb[0].mxu0 %v5533_v11  ;;  %3537 = vmatmul.mubr.bf16.vlgmr.msra.gmra.mrb[0].mxu1 %v5533_v11 }
  0x5b   :  { %3546 = vmatpush1.bf16.msra.mxu0 %v4859_v14  ;;  %3587 = vmatpush1.bf16.msra.mxu1 %v4861_v15  ;;  %v124_v14 = vld [vmem:[#allocation5 + $0x228] sm:$0xff] }
  0x5c   :  { %3547 = vmatprep.subr.bf16.mxu0 %v4924_v16  ;;  %3588 = vmatprep.subr.bf16.mxu1 %v4926_v17  ;;  %v156_v15 = vld [vmem:[#allocation5 + $0x328] sm:$0xff]  ;;  %v4863_v16 = vcombine.low %v59_v3, %v91_v4  ;;  %v4865_v17 = vcombine.low %v60_v5, %v92_v6  ;;  %v5312_v3 = vcombine.high %v507_v60, %v539_v61  ;;  %v61_v5 = vld [vmem:[#allocation5 + $0x30] sm:$0xff] }
  0x5d   :  { %3577 = vmatprep.mubr.bf16.mxu0 %v5473_v0  ;;  %3618 = vmatprep.mubr.bf16.mxu1 %v5473_v0  ;;  %v4930_v19 = vcombine.high %v124_v14, %v156_v15  ;;  %v93_v6 = vld [vmem:[#allocation5 + $0x130] sm:$0xff] }
  0x5f   :  { %3548 = vmatpush1.bf16.msra.mxu0 %v4923_v22  ;;  %3589 = vmatpush1.bf16.msra.mxu1 %v4925_v23  ;;  %v188_v22 = vld [vmem:[#allocation5 + $0x428] sm:$0xff] }
  0x60   :  { %3549 = vmatprep.subr.bf16.mxu0 %v4988_v24  ;;  %3590 = vmatprep.subr.bf16.mxu1 %v4990_v25  ;;  %v220_v23 = vld [vmem:[#allocation5 + $0x528] sm:$0xff]  ;;  %v4927_v24 = vcombine.low %v123_v12, %v155_v13  ;;  %v4929_v25 = vcombine.low %v124_v14, %v156_v15  ;;  %v4868_v12 = vcombine.high %v61_v5, %v93_v6  ;;  %v125_v14 = vld [vmem:[#allocation5 + $0x230] sm:$0xff] }
  0x61   :  { %v4994_v27 = vcombine.high %v188_v22, %v220_v23  ;;  %v157_v15 = vld [vmem:[#allocation5 + $0x330] sm:$0xff] }
  0x63   :  { %3550 = vmatpush1.bf16.msra.mxu0 %v4987_v30  ;;  %3591 = vmatpush1.bf16.msra.mxu1 %v4989_v31  ;;  %v252_v30 = vld [vmem:[#allocation5 + $0x628] sm:$0xff] }
  0x64   :  { %3551 = vmatprep.subr.bf16.mxu0 %v5052_v32  ;;  %3592 = vmatprep.subr.bf16.mxu1 %v5054_v33  ;;  %v284_v31 = vld [vmem:[#allocation5 + $0x728] sm:$0xff]  ;;  %v4991_v32 = vcombine.low %v187_v20, %v219_v21  ;;  %v4993_v33 = vcombine.low %v188_v22, %v220_v23  ;;  %v4932_v20 = vcombine.high %v125_v14, %v157_v15  ;;  %v189_v22 = vld [vmem:[#allocation5 + $0x430] sm:$0xff] }
  0x65   :  { %v5058_v35 = vcombine.high %v252_v30, %v284_v31  ;;  %v221_v23 = vld [vmem:[#allocation5 + $0x530] sm:$0xff] }
  0x67   :  { %3552 = vmatpush1.bf16.msra.mxu0 %v5051_v38  ;;  %3593 = vmatpush1.bf16.msra.mxu1 %v5053_v39  ;;  %v316_v38 = vld [vmem:[#allocation5 + $0x828] sm:$0xff] }
  0x68   :  { %3553 = vmatprep.subr.bf16.mxu0 %v5116_v40  ;;  %3594 = vmatprep.subr.bf16.mxu1 %v5118_v41  ;;  %v348_v39 = vld [vmem:[#allocation5 + $0x928] sm:$0xff]  ;;  %v5055_v40 = vcombine.low %v251_v28, %v283_v29  ;;  %v5057_v41 = vcombine.low %v252_v30, %v284_v31  ;;  %v4996_v28 = vcombine.high %v189_v22, %v221_v23  ;;  %v253_v30 = vld [vmem:[#allocation5 + $0x630] sm:$0xff] }
  0x69   :  { %v5122_v43 = vcombine.high %v316_v38, %v348_v39  ;;  %v285_v31 = vld [vmem:[#allocation5 + $0x730] sm:$0xff] }
  0x6b   :  { %3554 = vmatpush1.bf16.msra.mxu0 %v5115_v46  ;;  %3595 = vmatpush1.bf16.msra.mxu1 %v5117_v47  ;;  %v380_v46 = vld [vmem:[#allocation5 + $0xa28] sm:$0xff] }
  0x6c   :  { %3555 = vmatprep.subr.bf16.mxu0 %v5180_v48  ;;  %3596 = vmatprep.subr.bf16.mxu1 %v5182_v49  ;;  %v412_v47 = vld [vmem:[#allocation5 + $0xb28] sm:$0xff]  ;;  %v5119_v48 = vcombine.low %v315_v36, %v347_v37  ;;  %v5121_v49 = vcombine.low %v316_v38, %v348_v39  ;;  %v5060_v36 = vcombine.high %v253_v30, %v285_v31  ;;  %v317_v38 = vld [vmem:[#allocation5 + $0x830] sm:$0xff] }
  0x6d   :  { %v5186_v51 = vcombine.high %v380_v46, %v412_v47  ;;  %v349_v39 = vld [vmem:[#allocation5 + $0x930] sm:$0xff] }
  0x6f   :  { %3556 = vmatpush1.bf16.msra.mxu0 %v5179_v54  ;;  %3597 = vmatpush1.bf16.msra.mxu1 %v5181_v55  ;;  %v444_v54 = vld [vmem:[#allocation5 + $0xc28] sm:$0xff] }
  0x70   :  { %3557 = vmatprep.subr.bf16.mxu0 %v5244_v56  ;;  %3598 = vmatprep.subr.bf16.mxu1 %v5246_v57  ;;  %v476_v55 = vld [vmem:[#allocation5 + $0xd28] sm:$0xff]  ;;  %v5183_v56 = vcombine.low %v379_v44, %v411_v45  ;;  %v5185_v57 = vcombine.low %v380_v46, %v412_v47  ;;  %v5124_v44 = vcombine.high %v317_v38, %v349_v39  ;;  %v381_v46 = vld [vmem:[#allocation5 + $0xa30] sm:$0xff] }
  0x71   :  { %v5250_v59 = vcombine.high %v444_v54, %v476_v55  ;;  %v413_v47 = vld [vmem:[#allocation5 + $0xb30] sm:$0xff] }
  0x73   :  { %3558 = vmatpush1.bf16.msra.mxu0 %v5243_v62  ;;  %3599 = vmatpush1.bf16.msra.mxu1 %v5245_v63  ;;  %v508_v62 = vld [vmem:[#allocation5 + $0xe28] sm:$0xff] }
  0x74   :  { %3559 = vmatprep.subr.bf16.mxu0 %v5308_v1  ;;  %3600 = vmatprep.subr.bf16.mxu1 %v5310_v2  ;;  %v540_v63 = vld [vmem:[#allocation5 + $0xf28] sm:$0xff]  ;;  %v5247_v1 = vcombine.low %v443_v52, %v475_v53  ;;  %v5249_v2 = vcombine.low %v444_v54, %v476_v55  ;;  %v5188_v52 = vcombine.high %v381_v46, %v413_v47  ;;  %v445_v54 = vld [vmem:[#allocation5 + $0xc30] sm:$0xff] }
  0x75   :  { %v5314_v4 = vcombine.high %v508_v62, %v540_v63  ;;  %v477_v55 = vld [vmem:[#allocation5 + $0xd30] sm:$0xff] }
  0x77   :  { %3560 = vmatpush1.bf16.msra.mxu0 %v5307_v7  ;;  %3601 = vmatpush1.bf16.msra.mxu1 %v5309_v8  ;;  %v62_v7 = vld [vmem:[#allocation5 + $0x38] sm:$0xff] }
  0x78   :  { %3627 = vmatprep.subr.bf16.mxu0 %v4864_v9  ;;  %3668 = vmatprep.subr.bf16.mxu1 %v4866_v10  ;;  %v94_v8 = vld [vmem:[#allocation5 + $0x138] sm:$0xff]  ;;  %v5311_v9 = vcombine.low %v507_v60, %v539_v61  ;;  %v5313_v10 = vcombine.low %v508_v62, %v540_v63  ;;  %v5252_v60 = vcombine.high %v445_v54, %v477_v55  ;;  %v509_v62 = vld [vmem:[#allocation5 + $0xe30] sm:$0xff] }
  0x79   :  { %v4870_v13 = vcombine.high %v62_v7, %v94_v8  ;;  %v541_v63 = vld [vmem:[#allocation5 + $0xf30] sm:$0xff] }
  0x7a   :  { %3578 = vmatmul.mubr.bf16.vlgmr.msra.gmra.mrb[4].mxu0 %v5533_v11  ;;  %3619 = vmatmul.mubr.bf16.vlgmr.msra.gmra.mrb[4].mxu1 %v5533_v11 }
  0x7b   :  { %3628 = vmatpush1.bf16.msra.mxu0 %v4863_v16  ;;  %3669 = vmatpush1.bf16.msra.mxu1 %v4865_v17  ;;  %v126_v16 = vld [vmem:[#allocation5 + $0x238] sm:$0xff] }
  0x7c   :  { %3629 = vmatprep.subr.bf16.mxu0 %v4928_v18  ;;  %3670 = vmatprep.subr.bf16.mxu1 %v4930_v19  ;;  %v158_v17 = vld [vmem:[#allocation5 + $0x338] sm:$0xff]  ;;  %v4867_v18 = vcombine.low %v61_v5, %v93_v6  ;;  %v4869_v19 = vcombine.low %v62_v7, %v94_v8  ;;  %v5316_v5 = vcombine.high %v509_v62, %v541_v63  ;;  %v63_v7 = vld [vmem:[#allocation5 + $0x40] sm:$0xff] }
  0x7d   :  { %3659 = vmatprep.mubr.bf16.mxu0 %v5473_v0  ;;  %3700 = vmatprep.mubr.bf16.mxu1 %v5473_v0  ;;  %v4934_v21 = vcombine.high %v126_v16, %v158_v17  ;;  %v95_v8 = vld [vmem:[#allocation5 + $0x140] sm:$0xff] }
  0x7f   :  { %3630 = vmatpush1.bf16.msra.mxu0 %v4927_v24  ;;  %3671 = vmatpush1.bf16.msra.mxu1 %v4929_v25  ;;  %v190_v24 = vld [vmem:[#allocation5 + $0x438] sm:$0xff] }
  0x80   :  { %3631 = vmatprep.subr.bf16.mxu0 %v4992_v26  ;;  %3672 = vmatprep.subr.bf16.mxu1 %v4994_v27  ;;  %v222_v25 = vld [vmem:[#allocation5 + $0x538] sm:$0xff]  ;;  %v4931_v26 = vcombine.low %v125_v14, %v157_v15  ;;  %v4933_v27 = vcombine.low %v126_v16, %v158_v17  ;;  %v4872_v14 = vcombine.high %v63_v7, %v95_v8  ;;  %v127_v16 = vld [vmem:[#allocation5 + $0x240] sm:$0xff] }
  0x81   :  { %v4998_v29 = vcombine.high %v190_v24, %v222_v25  ;;  %v159_v17 = vld [vmem:[#allocation5 + $0x340] sm:$0xff] }
  0x83   :  { %3632 = vmatpush1.bf16.msra.mxu0 %v4991_v32  ;;  %3673 = vmatpush1.bf16.msra.mxu1 %v4993_v33  ;;  %v254_v32 = vld [vmem:[#allocation5 + $0x638] sm:$0xff] }
  0x84   :  { %3633 = vmatprep.subr.bf16.mxu0 %v5056_v34  ;;  %3674 = vmatprep.subr.bf16.mxu1 %v5058_v35  ;;  %v286_v33 = vld [vmem:[#allocation5 + $0x738] sm:$0xff]  ;;  %v4995_v34 = vcombine.low %v189_v22, %v221_v23  ;;  %v4997_v35 = vcombine.low %v190_v24, %v222_v25  ;;  %v4936_v22 = vcombine.high %v127_v16, %v159_v17  ;;  %v191_v24 = vld [vmem:[#allocation5 + $0x440] sm:$0xff] }
  0x85   :  { %v5062_v37 = vcombine.high %v254_v32, %v286_v33  ;;  %v223_v25 = vld [vmem:[#allocation5 + $0x540] sm:$0xff] }
  0x87   :  { %3634 = vmatpush1.bf16.msra.mxu0 %v5055_v40  ;;  %3675 = vmatpush1.bf16.msra.mxu1 %v5057_v41  ;;  %v318_v40 = vld [vmem:[#allocation5 + $0x838] sm:$0xff] }
  0x88   :  { %3635 = vmatprep.subr.bf16.mxu0 %v5120_v42  ;;  %3676 = vmatprep.subr.bf16.mxu1 %v5122_v43  ;;  %v350_v41 = vld [vmem:[#allocation5 + $0x938] sm:$0xff]  ;;  %v5059_v42 = vcombine.low %v253_v30, %v285_v31  ;;  %v5061_v43 = vcombine.low %v254_v32, %v286_v33  ;;  %v5000_v30 = vcombine.high %v191_v24, %v223_v25  ;;  %v255_v32 = vld [vmem:[#allocation5 + $0x640] sm:$0xff] }
  0x89   :  { %v5126_v45 = vcombine.high %v318_v40, %v350_v41  ;;  %v287_v33 = vld [vmem:[#allocation5 + $0x740] sm:$0xff] }
  0x8b   :  { %3636 = vmatpush1.bf16.msra.mxu0 %v5119_v48  ;;  %3677 = vmatpush1.bf16.msra.mxu1 %v5121_v49  ;;  %v382_v48 = vld [vmem:[#allocation5 + $0xa38] sm:$0xff] }
  0x8c   :  { %3637 = vmatprep.subr.bf16.mxu0 %v5184_v50  ;;  %3678 = vmatprep.subr.bf16.mxu1 %v5186_v51  ;;  %v414_v49 = vld [vmem:[#allocation5 + $0xb38] sm:$0xff]  ;;  %v5123_v50 = vcombine.low %v317_v38, %v349_v39  ;;  %v5125_v51 = vcombine.low %v318_v40, %v350_v41  ;;  %v5064_v38 = vcombine.high %v255_v32, %v287_v33  ;;  %v319_v40 = vld [vmem:[#allocation5 + $0x840] sm:$0xff] }
  0x8d   :  { %v5190_v53 = vcombine.high %v382_v48, %v414_v49  ;;  %v351_v41 = vld [vmem:[#allocation5 + $0x940] sm:$0xff] }
  0x8f   :  { %3638 = vmatpush1.bf16.msra.mxu0 %v5183_v56  ;;  %3679 = vmatpush1.bf16.msra.mxu1 %v5185_v57  ;;  %v446_v56 = vld [vmem:[#allocation5 + $0xc38] sm:$0xff] }
  0x90   :  { %3639 = vmatprep.subr.bf16.mxu0 %v5248_v58  ;;  %3680 = vmatprep.subr.bf16.mxu1 %v5250_v59  ;;  %v478_v57 = vld [vmem:[#allocation5 + $0xd38] sm:$0xff]  ;;  %v5187_v58 = vcombine.low %v381_v46, %v413_v47  ;;  %v5189_v59 = vcombine.low %v382_v48, %v414_v49  ;;  %v5128_v46 = vcombine.high %v319_v40, %v351_v41  ;;  %v383_v48 = vld [vmem:[#allocation5 + $0xa40] sm:$0xff] }
  0x91   :  { %v5254_v61 = vcombine.high %v446_v56, %v478_v57  ;;  %v415_v49 = vld [vmem:[#allocation5 + $0xb40] sm:$0xff] }
  0x93   :  { %3640 = vmatpush1.bf16.msra.mxu0 %v5247_v1  ;;  %3681 = vmatpush1.bf16.msra.mxu1 %v5249_v2  ;;  %v510_v1 = vld [vmem:[#allocation5 + $0xe38] sm:$0xff] }
  0x94   :  { %3641 = vmatprep.subr.bf16.mxu0 %v5312_v3  ;;  %3682 = vmatprep.subr.bf16.mxu1 %v5314_v4  ;;  %v542_v2 = vld [vmem:[#allocation5 + $0xf38] sm:$0xff]  ;;  %v5251_v3 = vcombine.low %v445_v54, %v477_v55  ;;  %v5253_v4 = vcombine.low %v446_v56, %v478_v57  ;;  %v5192_v54 = vcombine.high %v383_v48, %v415_v49  ;;  %v447_v56 = vld [vmem:[#allocation5 + $0xc40] sm:$0xff] }
  0x95   :  { %v5318_v6 = vcombine.high %v510_v1, %v542_v2  ;;  %v479_v57 = vld [vmem:[#allocation5 + $0xd40] sm:$0xff] }
  0x97   :  { %3642 = vmatpush1.bf16.msra.mxu0 %v5311_v9  ;;  %3683 = vmatpush1.bf16.msra.mxu1 %v5313_v10  ;;  %v64_v9 = vld [vmem:[#allocation5 + $0x48] sm:$0xff] }
  0x98   :  { %3709 = vmatprep.subr.bf16.mxu0 %v4868_v12  ;;  %3750 = vmatprep.subr.bf16.mxu1 %v4870_v13  ;;  %v96_v10 = vld [vmem:[#allocation5 + $0x148] sm:$0xff]  ;;  %v5315_v12 = vcombine.low %v509_v62, %v541_v63  ;;  %v5317_v13 = vcombine.low %v510_v1, %v542_v2  ;;  %v5256_v62 = vcombine.high %v447_v56, %v479_v57  ;;  %v511_v1 = vld [vmem:[#allocation5 + $0xe40] sm:$0xff] }
  0x99   :  { %v4874_v15 = vcombine.high %v64_v9, %v96_v10  ;;  %v543_v2 = vld [vmem:[#allocation5 + $0xf40] sm:$0xff] }
  0x9a   :  { %3660 = vmatmul.mubr.bf16.vlgmr.msra.gmra.mrb[8].mxu0 %v5533_v11  ;;  %3701 = vmatmul.mubr.bf16.vlgmr.msra.gmra.mrb[8].mxu1 %v5533_v11 }
  0x9b   :  { %3710 = vmatpush1.bf16.msra.mxu0 %v4867_v18  ;;  %3751 = vmatpush1.bf16.msra.mxu1 %v4869_v19  ;;  %v128_v18 = vld [vmem:[#allocation5 + $0x248] sm:$0xff] }
  0x9c   :  { %3711 = vmatprep.subr.bf16.mxu0 %v4932_v20  ;;  %3752 = vmatprep.subr.bf16.mxu1 %v4934_v21  ;;  %v160_v19 = vld [vmem:[#allocation5 + $0x348] sm:$0xff]  ;;  %v4871_v20 = vcombine.low %v63_v7, %v95_v8  ;;  %v4873_v21 = vcombine.low %v64_v9, %v96_v10  ;;  %v5320_v7 = vcombine.high %v511_v1, %v543_v2  ;;  %v65_v9 = vld [vmem:[#allocation5 + $0x50] sm:$0xff] }
  0x9d   :  { %3741 = vmatprep.mubr.bf16.mxu0 %v5473_v0  ;;  %3782 = vmatprep.mubr.bf16.mxu1 %v5473_v0  ;;  %v4938_v23 = vcombine.high %v128_v18, %v160_v19  ;;  %v97_v10 = vld [vmem:[#allocation5 + $0x150] sm:$0xff] }
  0x9f   :  { %3712 = vmatpush1.bf16.msra.mxu0 %v4931_v26  ;;  %3753 = vmatpush1.bf16.msra.mxu1 %v4933_v27  ;;  %v192_v26 = vld [vmem:[#allocation5 + $0x448] sm:$0xff] }
  0xa0   :  { %3713 = vmatprep.subr.bf16.mxu0 %v4996_v28  ;;  %3754 = vmatprep.subr.bf16.mxu1 %v4998_v29  ;;  %v224_v27 = vld [vmem:[#allocation5 + $0x548] sm:$0xff]  ;;  %v4935_v28 = vcombine.low %v127_v16, %v159_v17  ;;  %v4937_v29 = vcombine.low %v128_v18, %v160_v19  ;;  %v4876_v16 = vcombine.high %v65_v9, %v97_v10  ;;  %v129_v18 = vld [vmem:[#allocation5 + $0x250] sm:$0xff] }
  0xa1   :  { %v5002_v31 = vcombine.high %v192_v26, %v224_v27  ;;  %v161_v19 = vld [vmem:[#allocation5 + $0x350] sm:$0xff] }
  0xa3   :  { %3714 = vmatpush1.bf16.msra.mxu0 %v4995_v34  ;;  %3755 = vmatpush1.bf16.msra.mxu1 %v4997_v35  ;;  %v256_v34 = vld [vmem:[#allocation5 + $0x648] sm:$0xff] }
  0xa4   :  { %3715 = vmatprep.subr.bf16.mxu0 %v5060_v36  ;;  %3756 = vmatprep.subr.bf16.mxu1 %v5062_v37  ;;  %v288_v35 = vld [vmem:[#allocation5 + $0x748] sm:$0xff]  ;;  %v4999_v36 = vcombine.low %v191_v24, %v223_v25  ;;  %v5001_v37 = vcombine.low %v192_v26, %v224_v27  ;;  %v4940_v24 = vcombine.high %v129_v18, %v161_v19  ;;  %v193_v26 = vld [vmem:[#allocation5 + $0x450] sm:$0xff] }
  0xa5   :  { %v5066_v39 = vcombine.high %v256_v34, %v288_v35  ;;  %v225_v27 = vld [vmem:[#allocation5 + $0x550] sm:$0xff] }
  0xa7   :  { %3716 = vmatpush1.bf16.msra.mxu0 %v5059_v42  ;;  %3757 = vmatpush1.bf16.msra.mxu1 %v5061_v43  ;;  %v320_v42 = vld [vmem:[#allocation5 + $0x848] sm:$0xff] }
  0xa8   :  { %3717 = vmatprep.subr.bf16.mxu0 %v5124_v44  ;;  %3758 = vmatprep.subr.bf16.mxu1 %v5126_v45  ;;  %v352_v43 = vld [vmem:[#allocation5 + $0x948] sm:$0xff]  ;;  %v5063_v44 = vcombine.low %v255_v32, %v287_v33  ;;  %v5065_v45 = vcombine.low %v256_v34, %v288_v35  ;;  %v5004_v32 = vcombine.high %v193_v26, %v225_v27  ;;  %v257_v34 = vld [vmem:[#allocation5 + $0x650] sm:$0xff] }
  0xa9   :  { %v5130_v47 = vcombine.high %v320_v42, %v352_v43  ;;  %v289_v35 = vld [vmem:[#allocation5 + $0x750] sm:$0xff] }
  0xab   :  { %3718 = vmatpush1.bf16.msra.mxu0 %v5123_v50  ;;  %3759 = vmatpush1.bf16.msra.mxu1 %v5125_v51  ;;  %v384_v50 = vld [vmem:[#allocation5 + $0xa48] sm:$0xff] }
  0xac   :  { %3719 = vmatprep.subr.bf16.mxu0 %v5188_v52  ;;  %3760 = vmatprep.subr.bf16.mxu1 %v5190_v53  ;;  %v416_v51 = vld [vmem:[#allocation5 + $0xb48] sm:$0xff]  ;;  %v5127_v52 = vcombine.low %v319_v40, %v351_v41  ;;  %v5129_v53 = vcombine.low %v320_v42, %v352_v43  ;;  %v5068_v40 = vcombine.high %v257_v34, %v289_v35  ;;  %v321_v42 = vld [vmem:[#allocation5 + $0x850] sm:$0xff] }
  0xad   :  { %v5194_v55 = vcombine.high %v384_v50, %v416_v51  ;;  %v353_v43 = vld [vmem:[#allocation5 + $0x950] sm:$0xff] }
  0xaf   :  { %3720 = vmatpush1.bf16.msra.mxu0 %v5187_v58  ;;  %3761 = vmatpush1.bf16.msra.mxu1 %v5189_v59  ;;  %v448_v58 = vld [vmem:[#allocation5 + $0xc48] sm:$0xff] }
  0xb0   :  { %3721 = vmatprep.subr.bf16.mxu0 %v5252_v60  ;;  %3762 = vmatprep.subr.bf16.mxu1 %v5254_v61  ;;  %v480_v59 = vld [vmem:[#allocation5 + $0xd48] sm:$0xff]  ;;  %v5191_v60 = vcombine.low %v383_v48, %v415_v49  ;;  %v5193_v61 = vcombine.low %v384_v50, %v416_v51  ;;  %v5132_v48 = vcombine.high %v321_v42, %v353_v43  ;;  %v385_v50 = vld [vmem:[#allocation5 + $0xa50] sm:$0xff] }
  0xb1   :  { %v5258_v63 = vcombine.high %v448_v58, %v480_v59  ;;  %v417_v51 = vld [vmem:[#allocation5 + $0xb50] sm:$0xff] }
  0xb3   :  { %3722 = vmatpush1.bf16.msra.mxu0 %v5251_v3  ;;  %3763 = vmatpush1.bf16.msra.mxu1 %v5253_v4  ;;  %v512_v3 = vld [vmem:[#allocation5 + $0xe48] sm:$0xff] }
  0xb4   :  { %3723 = vmatprep.subr.bf16.mxu0 %v5316_v5  ;;  %3764 = vmatprep.subr.bf16.mxu1 %v5318_v6  ;;  %v544_v4 = vld [vmem:[#allocation5 + $0xf48] sm:$0xff]  ;;  %v5255_v5 = vcombine.low %v447_v56, %v479_v57  ;;  %v5257_v6 = vcombine.low %v448_v58, %v480_v59  ;;  %v5196_v56 = vcombine.high %v385_v50, %v417_v51  ;;  %v449_v58 = vld [vmem:[#allocation5 + $0xc50] sm:$0xff] }
  0xb5   :  { %v5322_v8 = vcombine.high %v512_v3, %v544_v4  ;;  %v481_v59 = vld [vmem:[#allocation5 + $0xd50] sm:$0xff] }
  0xb7   :  { %3724 = vmatpush1.bf16.msra.mxu0 %v5315_v12  ;;  %3765 = vmatpush1.bf16.msra.mxu1 %v5317_v13  ;;  %v66_v12 = vld [vmem:[#allocation5 + $0x58] sm:$0xff] }
  0xb8   :  { %3791 = vmatprep.subr.bf16.mxu0 %v4872_v14  ;;  %3832 = vmatprep.subr.bf16.mxu1 %v4874_v15  ;;  %v98_v13 = vld [vmem:[#allocation5 + $0x158] sm:$0xff]  ;;  %v5319_v14 = vcombine.low %v511_v1, %v543_v2  ;;  %v5321_v15 = vcombine.low %v512_v3, %v544_v4  ;;  %v5260_v1 = vcombine.high %v449_v58, %v481_v59  ;;  %v513_v3 = vld [vmem:[#allocation5 + $0xe50] sm:$0xff] }
  0xb9   :  { %v4878_v17 = vcombine.high %v66_v12, %v98_v13  ;;  %v545_v4 = vld [vmem:[#allocation5 + $0xf50] sm:$0xff] }
  0xba   :  { %3742 = vmatmul.mubr.bf16.vlgmr.msra.gmra.mrb[12].mxu0 %v5533_v11  ;;  %3783 = vmatmul.mubr.bf16.vlgmr.msra.gmra.mrb[12].mxu1 %v5533_v11 }
  0xbb   :  { %3792 = vmatpush1.bf16.msra.mxu0 %v4871_v20  ;;  %3833 = vmatpush1.bf16.msra.mxu1 %v4873_v21  ;;  %v130_v20 = vld [vmem:[#allocation5 + $0x258] sm:$0xff] }
  0xbc   :  { %3793 = vmatprep.subr.bf16.mxu0 %v4936_v22  ;;  %3834 = vmatprep.subr.bf16.mxu1 %v4938_v23  ;;  %v162_v21 = vld [vmem:[#allocation5 + $0x358] sm:$0xff]  ;;  %v4875_v22 = vcombine.low %v65_v9, %v97_v10  ;;  %v4877_v23 = vcombine.low %v66_v12, %v98_v13  ;;  %v5324_v9 = vcombine.high %v513_v3, %v545_v4  ;;  %v67_v12 = vld [vmem:[#allocation5 + $0x60] sm:$0xff] }
  0xbd   :  { %3823 = vmatprep.mubr.bf16.mxu0 %v5473_v0  ;;  %3864 = vmatprep.mubr.bf16.mxu1 %v5473_v0  ;;  %v4942_v25 = vcombine.high %v130_v20, %v162_v21  ;;  %v99_v13 = vld [vmem:[#allocation5 + $0x160] sm:$0xff] }
  0xbf   :  { %3794 = vmatpush1.bf16.msra.mxu0 %v4935_v28  ;;  %3835 = vmatpush1.bf16.msra.mxu1 %v4937_v29  ;;  %v194_v28 = vld [vmem:[#allocation5 + $0x458] sm:$0xff] }
  0xc0   :  { %3795 = vmatprep.subr.bf16.mxu0 %v5000_v30  ;;  %3836 = vmatprep.subr.bf16.mxu1 %v5002_v31  ;;  %v226_v29 = vld [vmem:[#allocation5 + $0x558] sm:$0xff]  ;;  %v4939_v30 = vcombine.low %v129_v18, %v161_v19  ;;  %v4941_v31 = vcombine.low %v130_v20, %v162_v21  ;;  %v4880_v18 = vcombine.high %v67_v12, %v99_v13  ;;  %v131_v20 = vld [vmem:[#allocation5 + $0x260] sm:$0xff] }
  0xc1   :  { %v5006_v33 = vcombine.high %v194_v28, %v226_v29  ;;  %v163_v21 = vld [vmem:[#allocation5 + $0x360] sm:$0xff] }
  0xc3   :  { %3796 = vmatpush1.bf16.msra.mxu0 %v4999_v36  ;;  %3837 = vmatpush1.bf16.msra.mxu1 %v5001_v37  ;;  %v258_v36 = vld [vmem:[#allocation5 + $0x658] sm:$0xff] }
  0xc4   :  { %3797 = vmatprep.subr.bf16.mxu0 %v5064_v38  ;;  %3838 = vmatprep.subr.bf16.mxu1 %v5066_v39  ;;  %v290_v37 = vld [vmem:[#allocation5 + $0x758] sm:$0xff]  ;;  %v5003_v38 = vcombine.low %v193_v26, %v225_v27  ;;  %v5005_v39 = vcombine.low %v194_v28, %v226_v29  ;;  %v4944_v26 = vcombine.high %v131_v20, %v163_v21  ;;  %v195_v28 = vld [vmem:[#allocation5 + $0x460] sm:$0xff] }
  0xc5   :  { %v5070_v41 = vcombine.high %v258_v36, %v290_v37  ;;  %v227_v29 = vld [vmem:[#allocation5 + $0x560] sm:$0xff] }
  0xc7   :  { %3798 = vmatpush1.bf16.msra.mxu0 %v5063_v44  ;;  %3839 = vmatpush1.bf16.msra.mxu1 %v5065_v45  ;;  %v322_v44 = vld [vmem:[#allocation5 + $0x858] sm:$0xff] }
  0xc8   :  { %3799 = vmatprep.subr.bf16.mxu0 %v5128_v46  ;;  %3840 = vmatprep.subr.bf16.mxu1 %v5130_v47  ;;  %v354_v45 = vld [vmem:[#allocation5 + $0x958] sm:$0xff]  ;;  %v5067_v46 = vcombine.low %v257_v34, %v289_v35  ;;  %v5069_v47 = vcombine.low %v258_v36, %v290_v37  ;;  %v5008_v34 = vcombine.high %v195_v28, %v227_v29  ;;  %v259_v36 = vld [vmem:[#allocation5 + $0x660] sm:$0xff] }
  0xc9   :  { %v5134_v49 = vcombine.high %v322_v44, %v354_v45  ;;  %v291_v37 = vld [vmem:[#allocation5 + $0x760] sm:$0xff] }
  0xcb   :  { %3800 = vmatpush1.bf16.msra.mxu0 %v5127_v52  ;;  %3841 = vmatpush1.bf16.msra.mxu1 %v5129_v53  ;;  %v386_v52 = vld [vmem:[#allocation5 + $0xa58] sm:$0xff] }
  0xcc   :  { %3801 = vmatprep.subr.bf16.mxu0 %v5192_v54  ;;  %3842 = vmatprep.subr.bf16.mxu1 %v5194_v55  ;;  %v418_v53 = vld [vmem:[#allocation5 + $0xb58] sm:$0xff]  ;;  %v5131_v54 = vcombine.low %v321_v42, %v353_v43  ;;  %v5133_v55 = vcombine.low %v322_v44, %v354_v45  ;;  %v5072_v42 = vcombine.high %v259_v36, %v291_v37  ;;  %v323_v44 = vld [vmem:[#allocation5 + $0x860] sm:$0xff] }
  0xcd   :  { %v5198_v57 = vcombine.high %v386_v52, %v418_v53  ;;  %v355_v45 = vld [vmem:[#allocation5 + $0x960] sm:$0xff] }
  0xcf   :  { %3802 = vmatpush1.bf16.msra.mxu0 %v5191_v60  ;;  %3843 = vmatpush1.bf16.msra.mxu1 %v5193_v61  ;;  %v450_v60 = vld [vmem:[#allocation5 + $0xc58] sm:$0xff] }
  0xd0   :  { %3803 = vmatprep.subr.bf16.mxu0 %v5256_v62  ;;  %3844 = vmatprep.subr.bf16.mxu1 %v5258_v63  ;;  %v482_v61 = vld [vmem:[#allocation5 + $0xd58] sm:$0xff]  ;;  %v5195_v62 = vcombine.low %v385_v50, %v417_v51  ;;  %v5197_v63 = vcombine.low %v386_v52, %v418_v53  ;;  %v5136_v50 = vcombine.high %v323_v44, %v355_v45  ;;  %v387_v52 = vld [vmem:[#allocation5 + $0xa60] sm:$0xff] }
  0xd1   :  { %v5262_v2 = vcombine.high %v450_v60, %v482_v61  ;;  %v419_v53 = vld [vmem:[#allocation5 + $0xb60] sm:$0xff] }
  0xd3   :  { %3804 = vmatpush1.bf16.msra.mxu0 %v5255_v5  ;;  %3845 = vmatpush1.bf16.msra.mxu1 %v5257_v6  ;;  %v514_v5 = vld [vmem:[#allocation5 + $0xe58] sm:$0xff] }
  0xd4   :  { %3805 = vmatprep.subr.bf16.mxu0 %v5320_v7  ;;  %3846 = vmatprep.subr.bf16.mxu1 %v5322_v8  ;;  %v546_v6 = vld [vmem:[#allocation5 + $0xf58] sm:$0xff]  ;;  %v5259_v7 = vcombine.low %v449_v58, %v481_v59  ;;  %v5261_v8 = vcombine.low %v450_v60, %v482_v61  ;;  %v5200_v58 = vcombine.high %v387_v52, %v419_v53  ;;  %v451_v60 = vld [vmem:[#allocation5 + $0xc60] sm:$0xff] }
  0xd5   :  { %v5326_v10 = vcombine.high %v514_v5, %v546_v6  ;;  %v483_v61 = vld [vmem:[#allocation5 + $0xd60] sm:$0xff] }
  0xd7   :  { %3806 = vmatpush1.bf16.msra.mxu0 %v5319_v14  ;;  %3847 = vmatpush1.bf16.msra.mxu1 %v5321_v15  ;;  %v68_v14 = vld [vmem:[#allocation5 + $0x68] sm:$0xff] }
  0xd8   :  { %3873 = vmatprep.subr.bf16.mxu0 %v4876_v16  ;;  %3914 = vmatprep.subr.bf16.mxu1 %v4878_v17  ;;  %v100_v15 = vld [vmem:[#allocation5 + $0x168] sm:$0xff]  ;;  %v5323_v16 = vcombine.low %v513_v3, %v545_v4  ;;  %v5325_v17 = vcombine.low %v514_v5, %v546_v6  ;;  %v5264_v3 = vcombine.high %v451_v60, %v483_v61  ;;  %v515_v5 = vld [vmem:[#allocation5 + $0xe60] sm:$0xff] }
  0xd9   :  { %v4882_v19 = vcombine.high %v68_v14, %v100_v15  ;;  %v547_v6 = vld [vmem:[#allocation5 + $0xf60] sm:$0xff] }
  0xda   :  { %3824 = vmatmul.mubr.bf16.vlgmr.msra.gmra.mrb[16].mxu0 %v5533_v11  ;;  %3865 = vmatmul.mubr.bf16.vlgmr.msra.gmra.mrb[16].mxu1 %v5533_v11 }
  0xdb   :  { %3874 = vmatpush1.bf16.msra.mxu0 %v4875_v22  ;;  %3915 = vmatpush1.bf16.msra.mxu1 %v4877_v23  ;;  %v132_v22 = vld [vmem:[#allocation5 + $0x268] sm:$0xff] }
  0xdc   :  { %3875 = vmatprep.subr.bf16.mxu0 %v4940_v24  ;;  %3916 = vmatprep.subr.bf16.mxu1 %v4942_v25  ;;  %v164_v23 = vld [vmem:[#allocation5 + $0x368] sm:$0xff]  ;;  %v4879_v24 = vcombine.low %v67_v12, %v99_v13  ;;  %v4881_v25 = vcombine.low %v68_v14, %v100_v15  ;;  %v5328_v12 = vcombine.high %v515_v5, %v547_v6  ;;  %v69_v14 = vld [vmem:[#allocation5 + $0x70] sm:$0xff] }
  0xdd   :  { %3905 = vmatprep.mubr.bf16.mxu0 %v5473_v0  ;;  %3946 = vmatprep.mubr.bf16.mxu1 %v5473_v0  ;;  %v4946_v27 = vcombine.high %v132_v22, %v164_v23  ;;  %v101_v15 = vld [vmem:[#allocation5 + $0x170] sm:$0xff] }
  0xdf   :  { %3876 = vmatpush1.bf16.msra.mxu0 %v4939_v30  ;;  %3917 = vmatpush1.bf16.msra.mxu1 %v4941_v31  ;;  %v196_v30 = vld [vmem:[#allocation5 + $0x468] sm:$0xff] }
  0xe0   :  { %3877 = vmatprep.subr.bf16.mxu0 %v5004_v32  ;;  %3918 = vmatprep.subr.bf16.mxu1 %v5006_v33  ;;  %v228_v31 = vld [vmem:[#allocation5 + $0x568] sm:$0xff]  ;;  %v4943_v32 = vcombine.low %v131_v20, %v163_v21  ;;  %v4945_v33 = vcombine.low %v132_v22, %v164_v23  ;;  %v4884_v20 = vcombine.high %v69_v14, %v101_v15  ;;  %v133_v22 = vld [vmem:[#allocation5 + $0x270] sm:$0xff] }
  0xe1   :  { %v5010_v35 = vcombine.high %v196_v30, %v228_v31  ;;  %v165_v23 = vld [vmem:[#allocation5 + $0x370] sm:$0xff] }
  0xe3   :  { %3878 = vmatpush1.bf16.msra.mxu0 %v5003_v38  ;;  %3919 = vmatpush1.bf16.msra.mxu1 %v5005_v39  ;;  %v260_v38 = vld [vmem:[#allocation5 + $0x668] sm:$0xff] }
  0xe4   :  { %3879 = vmatprep.subr.bf16.mxu0 %v5068_v40  ;;  %3920 = vmatprep.subr.bf16.mxu1 %v5070_v41  ;;  %v292_v39 = vld [vmem:[#allocation5 + $0x768] sm:$0xff]  ;;  %v5007_v40 = vcombine.low %v195_v28, %v227_v29  ;;  %v5009_v41 = vcombine.low %v196_v30, %v228_v31  ;;  %v4948_v28 = vcombine.high %v133_v22, %v165_v23  ;;  %v197_v30 = vld [vmem:[#allocation5 + $0x470] sm:$0xff] }
  0xe5   :  { %v5074_v43 = vcombine.high %v260_v38, %v292_v39  ;;  %v229_v31 = vld [vmem:[#allocation5 + $0x570] sm:$0xff] }
  0xe7   :  { %3880 = vmatpush1.bf16.msra.mxu0 %v5067_v46  ;;  %3921 = vmatpush1.bf16.msra.mxu1 %v5069_v47  ;;  %v324_v46 = vld [vmem:[#allocation5 + $0x868] sm:$0xff] }
  0xe8   :  { %3881 = vmatprep.subr.bf16.mxu0 %v5132_v48  ;;  %3922 = vmatprep.subr.bf16.mxu1 %v5134_v49  ;;  %v356_v47 = vld [vmem:[#allocation5 + $0x968] sm:$0xff]  ;;  %v5071_v48 = vcombine.low %v259_v36, %v291_v37  ;;  %v5073_v49 = vcombine.low %v260_v38, %v292_v39  ;;  %v5012_v36 = vcombine.high %v197_v30, %v229_v31  ;;  %v261_v38 = vld [vmem:[#allocation5 + $0x670] sm:$0xff] }
  0xe9   :  { %v5138_v51 = vcombine.high %v324_v46, %v356_v47  ;;  %v293_v39 = vld [vmem:[#allocation5 + $0x770] sm:$0xff] }
  0xeb   :  { %3882 = vmatpush1.bf16.msra.mxu0 %v5131_v54  ;;  %3923 = vmatpush1.bf16.msra.mxu1 %v5133_v55  ;;  %v388_v54 = vld [vmem:[#allocation5 + $0xa68] sm:$0xff] }
  0xec   :  { %3883 = vmatprep.subr.bf16.mxu0 %v5196_v56  ;;  %3924 = vmatprep.subr.bf16.mxu1 %v5198_v57  ;;  %v420_v55 = vld [vmem:[#allocation5 + $0xb68] sm:$0xff]  ;;  %v5135_v56 = vcombine.low %v323_v44, %v355_v45  ;;  %v5137_v57 = vcombine.low %v324_v46, %v356_v47  ;;  %v5076_v45 = vcombine.high %v261_v38, %v293_v39  ;;  %v325_v47 = vld [vmem:[#allocation5 + $0x870] sm:$0xff] }
  0xed   :  { %v5202_v59 = vcombine.high %v388_v54, %v420_v55 }
  0xef   :  { %3884 = vmatpush1.bf16.msra.mxu0 %v5195_v62  ;;  %3925 = vmatpush1.bf16.msra.mxu1 %v5197_v63  ;;  %v452_v62 = vld [vmem:[#allocation5 + $0xc68] sm:$0xff] }
  0xf0   :  { %3885 = vmatprep.subr.bf16.mxu0 %v5260_v1  ;;  %3926 = vmatprep.subr.bf16.mxu1 %v5262_v2  ;;  %v484_v63 = vld [vmem:[#allocation5 + $0xd68] sm:$0xff]  ;;  %v5199_v1 = vcombine.low %v387_v52, %v419_v53  ;;  %v5201_v2 = vcombine.low %v388_v54, %v420_v55  ;;  %v5075_v52 = vcombine.low %v261_v38, %v293_v39  ;;  %v71_v39 = vld [vmem:[#allocation5 + $0x80] sm:$0xff] }
  0xf1   :  { %v5266_v4 = vcombine.high %v452_v62, %v484_v63 }
  0xf3   :  { %3886 = vmatpush1.bf16.msra.mxu0 %v5259_v7  ;;  %3927 = vmatpush1.bf16.msra.mxu1 %v5261_v8  ;;  %v516_v7 = vld [vmem:[#allocation5 + $0xe68] sm:$0xff] }
  0xf4   :  { %3887 = vmatprep.subr.bf16.mxu0 %v5324_v9  ;;  %3928 = vmatprep.subr.bf16.mxu1 %v5326_v10  ;;  %v548_v8 = vld [vmem:[#allocation5 + $0xf68] sm:$0xff]  ;;  %v5263_v9 = vcombine.low %v451_v60, %v483_v61  ;;  %v5265_v10 = vcombine.low %v452_v62, %v484_v63  ;;  %v422_v60 = vld [vmem:[#allocation5 + $0xb78] sm:$0xff]  ;;  %v5568_v62 = vld [vmem:[#allocation7] sm:$0xff] }
  0xf5   :  { %v5330_v13 = vcombine.high %v516_v7, %v548_v8 }
  0xf7   :  { %3888 = vmatpush1.bf16.msra.mxu0 %v5323_v16  ;;  %3929 = vmatpush1.bf16.msra.mxu1 %v5325_v17  ;;  %v70_v16 = vld [vmem:[#allocation5 + $0x78] sm:$0xff] }
  0xf8   :  { %3955 = vmatprep.subr.bf16.mxu0 %v4880_v18  ;;  %3996 = vmatprep.subr.bf16.mxu1 %v4882_v19  ;;  %v102_v17 = vld [vmem:[#allocation5 + $0x178] sm:$0xff]  ;;  %v5327_v18 = vcombine.low %v515_v5, %v547_v6  ;;  %v5329_v19 = vcombine.low %v516_v7, %v548_v8  ;;  %v453_v6 = vld [vmem:[#allocation5 + $0xc70] sm:$0xff] }
  0xf9   :  { %v4886_v21 = vcombine.high %v70_v16, %v102_v17  ;;  %v485_v7 = vld [vmem:[#allocation5 + $0xd70] sm:$0xff] }
  0xfa   :  { %3906 = vmatmul.mubr.bf16.vlgmr.msra.gmra.mrb[20].mxu0 %v5533_v11  ;;  %3947 = vmatmul.mubr.bf16.vlgmr.msra.gmra.mrb[20].mxu1 %v5533_v11 }
  0xfb   :  { %3956 = vmatpush1.bf16.msra.mxu0 %v4879_v24  ;;  %3997 = vmatpush1.bf16.msra.mxu1 %v4881_v25  ;;  %v134_v24 = vld [vmem:[#allocation5 + $0x278] sm:$0xff] }
  0xfc   :  { %3957 = vmatprep.subr.bf16.mxu0 %v4944_v26  ;;  %3998 = vmatprep.subr.bf16.mxu1 %v4946_v27  ;;  %v166_v25 = vld [vmem:[#allocation5 + $0x378] sm:$0xff]  ;;  %v4883_v26 = vcombine.low %v69_v14, %v101_v15  ;;  %v4885_v27 = vcombine.low %v70_v16, %v102_v17  ;;  %v5268_v17 = vcombine.high %v453_v6, %v485_v7 }
  0xfd   :  { %3987 = vmatprep.mubr.bf16.mxu0 %v5473_v0  ;;  %4028 = vmatprep.mubr.bf16.mxu1 %v5473_v0  ;;  %v4950_v29 = vcombine.high %v134_v24, %v166_v25 }
  0xff   :  { %3958 = vmatpush1.bf16.msra.mxu0 %v4943_v32  ;;  %3999 = vmatpush1.bf16.msra.mxu1 %v4945_v33  ;;  %v198_v32 = vld [vmem:[#allocation5 + $0x478] sm:$0xff] }
 0x100   :  { %3959 = vmatprep.subr.bf16.mxu0 %v5008_v34  ;;  %4000 = vmatprep.subr.bf16.mxu1 %v5010_v35  ;;  %v230_v33 = vld [vmem:[#allocation5 + $0x578] sm:$0xff]  ;;  %v4947_v34 = vcombine.low %v133_v22, %v165_v23  ;;  %v4949_v35 = vcombine.low %v134_v24, %v166_v25 }
 0x101   :  { %v5014_v37 = vcombine.high %v198_v32, %v230_v33  ;;  %v5013_v44 = vcombine.low %v198_v32, %v230_v33  ;;  %v518_v25 = vld [vmem:[#allocation5 + $0xe78] sm:$0xff] }
 0x103   :  { %3960 = vmatpush1.bf16.msra.mxu0 %v5007_v40  ;;  %4001 = vmatpush1.bf16.msra.mxu1 %v5009_v41  ;;  %v262_v40 = vld [vmem:[#allocation5 + $0x678] sm:$0xff] }
 0x104   :  { %3961 = vmatprep.subr.bf16.mxu0 %v5072_v42  ;;  %4002 = vmatprep.subr.bf16.mxu1 %v5074_v43  ;;  %v294_v41 = vld [vmem:[#allocation5 + $0x778] sm:$0xff]  ;;  %v583_v42 = vlaneseq  ;;  %v5011_v43 = vcombine.low %v197_v30, %v229_v31  ;;  %v5267_v31 = vcombine.low %v453_v6, %v485_v7  ;;  %v263_v6 = vld [vmem:[#allocation5 + $0x680] sm:$0xff] }
 0x105   :  { %v5078_v46 = vcombine.high %v262_v40, %v294_v41  ;;  %v5077_v53 = vcombine.low %v262_v40, %v294_v41  ;;  %v103_v40 = vld [vmem:[#allocation5 + $0x180] sm:$0xff]  ;;  %v72_v41 = vld [vmem:[#allocation5 + $0x88] sm:$0xff] }
 0x106   :  { %v295_v7 = vld [vmem:[#allocation5 + $0x780] sm:$0xff] }
 0x107   :  { %3962 = vmatpush1.bf16.msra.mxu0 %v5071_v48  ;;  %4003 = vmatpush1.bf16.msra.mxu1 %v5073_v49  ;;  %v357_v48 = vld [vmem:[#allocation5 + $0x970] sm:$0xff]  ;;  %v326_v49 = vld [vmem:[#allocation5 + $0x878] sm:$0xff] }
 0x108   :  { %3963 = vmatprep.subr.bf16.mxu0 %v5136_v50  ;;  %4004 = vmatprep.subr.bf16.mxu1 %v5138_v51  ;;  %v358_v50 = vld [vmem:[#allocation5 + $0x978] sm:$0xff]  ;;  %v5563_v51 = vshrl.u32 %v583_v42, 7  ;;  %v5140_v54 = vcombine.high %v325_v47, %v357_v48  ;;  %v5139_v61 = vcombine.low %v325_v47, %v357_v48  ;;  %v104_v42 = vld [vmem:[#allocation5 + $0x188] sm:$0xff]  ;;  %v135_v47 = vld [vmem:[#allocation5 + $0x280] sm:$0xff] }
 0x109   :  { %v5142_v55 = vcombine.high %v326_v49, %v358_v50  ;;  %v167_v48 = vld [vmem:[#allocation5 + $0x380] sm:$0xff] }
 0x10a   :  { %v5571_v63 = vsub.s32 2, %v5563_v51 }
 0x10b   :  { %3964 = vmatpush1.bf16.msra.mxu0 %v5135_v56  ;;  %4005 = vmatpush1.bf16.msra.mxu1 %v5137_v57  ;;  %v389_v56 = vld [vmem:[#allocation5 + $0xa70] sm:$0xff] }
 0x10c   :  { %3965 = vmatprep.subr.bf16.mxu0 %v5200_v58  ;;  %4006 = vmatprep.subr.bf16.mxu1 %v5202_v59  ;;  %v421_v57 = vld [vmem:[#allocation5 + $0xb70] sm:$0xff]  ;;  %v5566_v58 = vsub.s32 0, %v5563_v51  ;;  %v390_v59 = vld [vmem:[#allocation5 + $0xa78] sm:$0xff] }
 0x10d   :  { %v5206_v5 = vcombine.high %v390_v59, %v422_v60  ;;  %v5203_v14 = vcombine.low %v389_v56, %v421_v57  ;;  %v5205_v16 = vcombine.low %v390_v59, %v422_v60  ;;  %v200_v59 = vld [vmem:[#allocation5 + $0x488] sm:$0xff] }
 0x10e   :  { %v586_v8 = vrot.slane %v5568_v62, %v5566_v58  ;;  %v232_v60 = vld [vmem:[#allocation5 + $0x588] sm:$0xff] }
 0x10f   :  { %3966 = vmatpush1.bf16.msra.mxu0 %v5199_v1  ;;  %4007 = vmatpush1.bf16.msra.mxu1 %v5201_v2  ;;  %v5574_v1 = vsub.s32 1, %v5563_v51  ;;  %v5141_v2 = vcombine.low %v326_v49, %v358_v50  ;;  %v136_v49 = vld [vmem:[#allocation5 + $0x288] sm:$0xff] }
 0x110   :  { %3967 = vmatprep.subr.bf16.mxu0 %v5264_v3  ;;  %4008 = vmatprep.subr.bf16.mxu1 %v5266_v4  ;;  %v5577_v3 = vsub.s32 3, %v5563_v51  ;;  %v5204_v4 = vcombine.high %v389_v56, %v421_v57  ;;  %v168_v50 = vld [vmem:[#allocation5 + $0x388] sm:$0xff]  ;;  %v199_v56 = vld [vmem:[#allocation5 + $0x480] sm:$0xff] }
 0x111   :  { %v231_v57 = vld [vmem:[#allocation5 + $0x580] sm:$0xff] }
 0x112   :  { %v598_v15 = vrot.slane %v5568_v62, %v5577_v3 }
 0x113   :  { %3968 = vmatpush1.bf16.msra.mxu0 %v5263_v9  ;;  %4009 = vmatpush1.bf16.msra.mxu1 %v5265_v10  ;;  %v454_v9 = vld [vmem:[#allocation5 + $0xc78] sm:$0xff] }
 0x114   :  { %3969 = vmatprep.subr.bf16.mxu0 %v5328_v12  ;;  %4010 = vmatprep.subr.bf16.mxu1 %v5330_v13  ;;  %v486_v10 = vld [vmem:[#allocation5 + $0xd78] sm:$0xff]  ;;  %v594_v12 = vrot.slane %v5568_v62, %v5571_v63  ;;  %v590_v13 = vrot.slane %v5568_v62, %v5574_v1 }
 0x117   :  { %3970 = vmatpush1.bf16.msra.mxu0 %v5327_v18  ;;  %4011 = vmatpush1.bf16.msra.mxu1 %v5329_v19  ;;  %v5270_v19 = vcombine.high %v454_v9, %v486_v10 }
 0x118   :  { %4037 = vmatprep.subr.bf16.mxu0 %v4884_v20  ;;  %4078 = vmatprep.subr.bf16.mxu1 %v4886_v21  ;;  %v517_v20 = vld [vmem:[#allocation5 + $0xe70] sm:$0xff] }
 0x119   :  { %v549_v21 = vld [vmem:[#allocation5 + $0xf70] sm:$0xff] }
 0x11a   :  { %3988 = vmatmul.mubr.bf16.vlgmr.msra.gmra.mrb[24].mxu0 %v5533_v11  ;;  %4029 = vmatmul.mubr.bf16.vlgmr.msra.gmra.mrb[24].mxu1 %v5533_v11 }
 0x11b   :  { %4038 = vmatpush1.bf16.msra.mxu0 %v4883_v26  ;;  %4079 = vmatpush1.bf16.msra.mxu1 %v4885_v27  ;;  %v550_v26 = vld [vmem:[#allocation5 + $0xf78] sm:$0xff] }
 0x11c   :  { %4039 = vmatprep.subr.bf16.mxu0 %v4948_v28  ;;  %4080 = vmatprep.subr.bf16.mxu1 %v4950_v29  ;;  %v5334_v38 = vcombine.high %v518_v25, %v550_v26 }
 0x11d   :  { %4069 = vmatprep.mubr.bf16.mxu0 %v5473_v0  ;;  %4110 = vmatprep.mubr.bf16.mxu1 %v5473_v0 }
 0x11f   :  { %4040 = vmatpush1.bf16.msra.mxu0 %v4947_v34  ;;  %4081 = vmatpush1.bf16.msra.mxu1 %v4949_v35  ;;  %v5269_v35 = vcombine.low %v454_v9, %v486_v10  ;;  %v296_v9 = vld [vmem:[#allocation5 + $0x788] sm:$0xff]  ;;  %v5015_v10 = vcombine.low %v199_v56, %v231_v57 }
 0x120   :  { %4041 = vmatprep.subr.bf16.mxu0 %v5012_v36  ;;  %4082 = vmatprep.subr.bf16.mxu1 %v5014_v37  ;;  %v5332_v36 = vcombine.high %v517_v20, %v549_v21 }
 0x123   :  { %4042 = vmatpush1.bf16.msra.mxu0 %v5011_v43  ;;  %4083 = vmatpush1.bf16.msra.mxu1 %v5013_v44  ;;  %v5331_v43 = vcombine.low %v517_v20, %v549_v21  ;;  %v5333_v44 = vcombine.low %v518_v25, %v550_v26  ;;  %v5592_v25 = vsub.s32 4, %v5563_v51  ;;  %v392_v26 = vld [vmem:[#allocation5 + $0xa88] sm:$0xff] }
 0x124   :  { %4043 = vmatprep.subr.bf16.mxu0 %v5076_v45  ;;  %4084 = vmatprep.subr.bf16.mxu1 %v5078_v46  ;;  %v4888_v45 = vcombine.high %v71_v39, %v103_v40  ;;  %v4890_v46 = vcombine.high %v72_v41, %v104_v42 }
 0x127   :  { %4044 = vmatpush1.bf16.msra.mxu0 %v5075_v52  ;;  %4085 = vmatpush1.bf16.msra.mxu1 %v5077_v53  ;;  %v4887_v52 = vcombine.low %v71_v39, %v103_v40  ;;  %v4889_v53 = vcombine.low %v72_v41, %v104_v42  ;;  %v488_v39 = vld [vmem:[#allocation5 + $0xd88] sm:$0xff] }
 0x128   :  { %4045 = vmatprep.subr.bf16.mxu0 %v5140_v54  ;;  %4086 = vmatprep.subr.bf16.mxu1 %v5142_v55  ;;  %v4952_v54 = vcombine.high %v135_v47, %v167_v48  ;;  %v4954_v55 = vcombine.high %v136_v49, %v168_v50 }
 0x12b   :  { %4046 = vmatpush1.bf16.msra.mxu0 %v5139_v61  ;;  %4087 = vmatpush1.bf16.msra.mxu1 %v5141_v2  ;;  %v4951_v61 = vcombine.low %v135_v47, %v167_v48  ;;  %v4953_v2 = vcombine.low %v136_v49, %v168_v50  ;;  %v519_v47 = vld [vmem:[#allocation5 + $0xe80] sm:$0xff] }
 0x12c   :  { %4047 = vmatprep.subr.bf16.mxu0 %v5204_v4  ;;  %4088 = vmatprep.subr.bf16.mxu1 %v5206_v5  ;;  %v5016_v4 = vcombine.high %v199_v56, %v231_v57  ;;  %v5018_v5 = vcombine.high %v200_v59, %v232_v60  ;;  %v551_v48 = vld [vmem:[#allocation5 + $0xf80] sm:$0xff] }
 0x12d   :  { %v3497_v18 = vpop.f32.mrb[0].mxu0  ;;  %v3538_v23 = vpop.f32.mrb[0].mxu1 }
 0x12e   :  { %v3498_v22 = vadd.f32 %v3497_v18, %v586_v8  ;;  %v3499_v24 = vpop.f32.mrb[1].mxu0  ;;  %v3539_v27 = vadd.f32 %v3538_v23, %v594_v12  ;;  %v3540_v29 = vpop.f32.mrb[1].mxu1  ;;  %v264_v8 = vld [vmem:[#allocation5 + $0x688] sm:$0xff]  ;;  %v5017_v12 = vcombine.low %v200_v59, %v232_v60  ;;  %v391_v23 = vld [vmem:[#allocation5 + $0xa80] sm:$0xff] }
 0x12f   :  { %v3500_v28 = vadd.f32 %v3499_v24, %v590_v13  ;;  %v3501_v30 = vpop.f32.mrb[2].mxu0  ;;  %4048 = vmatpush1.bf16.msra.mxu0 %v5203_v14  ;;  %v3541_v32 = vadd.f32 %v3540_v29, %v598_v15  ;;  %v3542_v33 = vpop.f32.mrb[2].mxu1  ;;  %4089 = vmatpush1.bf16.msra.mxu1 %v5205_v16  ;;  %v5080_v13 = vcombine.high %v263_v6, %v295_v7  ;;  %v327_v15 = vld [vmem:[#allocation5 + $0x880] sm:$0xff]  ;;  %v360_v18 = vld [vmem:[#allocation5 + $0x988] sm:$0xff]  ;;  %v5595_v29 = vsub.s32 6, %v5563_v51 }
 0x130   :  { %4775 = vst [vmem:[#allocation8] sm:$0xff] %v3498_v22  ;;  %v3502_v34 = vpop.f32.mrb[3].mxu0  ;;  %4049 = vmatprep.subr.bf16.mxu0 %v5268_v17  ;;  %4777 = vst [vmem:[#allocation8 + $0x10] sm:$0xff] %v3539_v27  ;;  %v3543_v37 = vpop.f32.mrb[3].mxu1  ;;  %4090 = vmatprep.subr.bf16.mxu1 %v5270_v19  ;;  %v5082_v14 = vcombine.high %v264_v8, %v296_v9  ;;  %v359_v16 = vld [vmem:[#allocation5 + $0x980] sm:$0xff]  ;;  %v328_v17 = vld [vmem:[#allocation5 + $0x888] sm:$0xff]  ;;  %v5079_v19 = vcombine.low %v263_v6, %v295_v7 }
 0x131   :  { %4776 = vst [vmem:[#allocation8 + $0x8] sm:$0xff] %v3500_v28  ;;  %4778 = vst [vmem:[#allocation8 + $0x18] sm:$0xff] %v3541_v32  ;;  %v5081_v20 = vcombine.low %v264_v8, %v296_v9  ;;  %v5144_v21 = vcombine.high %v327_v15, %v359_v16  ;;  %v5146_v22 = vcombine.high %v328_v17, %v360_v18  ;;  %v423_v24 = vld [vmem:[#allocation5 + $0xb80] sm:$0xff]  ;;  %v424_v27 = vld [vmem:[#allocation5 + $0xb88] sm:$0xff]  ;;  %v5598_v30 = vsub.s32 5, %v5563_v51 }
 0x132   :  { %v5143_v28 = vcombine.low %v327_v15, %v359_v16  ;;  %v5601_v32 = vsub.s32 7, %v5563_v51  ;;  %v5208_v33 = vcombine.high %v391_v23, %v423_v24  ;;  %v5210_v34 = vcombine.high %v392_v26, %v424_v27  ;;  %v73_v8 = vld [vmem:[#allocation5 + $0x90] sm:$0xff] }
 0x133   :  { %4050 = vmatpush1.bf16.msra.mxu0 %v5267_v31  ;;  %4091 = vmatpush1.bf16.msra.mxu1 %v5269_v35  ;;  %v5145_v31 = vcombine.low %v328_v17, %v360_v18  ;;  %v455_v35 = vld [vmem:[#allocation5 + $0xc80] sm:$0xff]  ;;  %v602_v37 = vrot.slane %v5568_v62, %v5592_v25  ;;  %v610_v40 = vrot.slane %v5568_v62, %v5595_v29  ;;  %v105_v9 = vld [vmem:[#allocation5 + $0x190] sm:$0xff] }
 0x134   :  { %4051 = vmatprep.subr.bf16.mxu0 %v5332_v36  ;;  %4092 = vmatprep.subr.bf16.mxu1 %v5334_v38  ;;  %v487_v36 = vld [vmem:[#allocation5 + $0xd80] sm:$0xff]  ;;  %v456_v38 = vld [vmem:[#allocation5 + $0xc88] sm:$0xff]  ;;  %v606_v41 = vrot.slane %v5568_v62, %v5598_v30  ;;  %v5207_v42 = vcombine.low %v391_v23, %v423_v24  ;;  %v614_v51 = vrot.slane %v5568_v62, %v5601_v32  ;;  %v137_v17 = vld [vmem:[#allocation5 + $0x290] sm:$0xff] }
 0x135   :  { %v5271_v60 = vcombine.low %v455_v35, %v487_v36  ;;  %v4892_v15 = vcombine.high %v73_v8, %v105_v9  ;;  %v169_v18 = vld [vmem:[#allocation5 + $0x390] sm:$0xff] }
 0x136   :  { %v4956_v23 = vcombine.high %v137_v17, %v169_v18 }
 0x137   :  { %4052 = vmatpush1.bf16.msra.mxu0 %v5331_v43  ;;  %4093 = vmatpush1.bf16.msra.mxu1 %v5333_v44  ;;  %v5209_v43 = vcombine.low %v392_v26, %v424_v27  ;;  %v5272_v44 = vcombine.high %v455_v35, %v487_v36  ;;  %v201_v26 = vld [vmem:[#allocation5 + $0x490] sm:$0xff] }
 0x138   :  { %4119 = vmatprep.subr.bf16.mxu0 %v4888_v45  ;;  %4160 = vmatprep.subr.bf16.mxu1 %v4890_v46  ;;  %v5274_v46 = vcombine.high %v456_v38, %v488_v39  ;;  %v233_v27 = vld [vmem:[#allocation5 + $0x590] sm:$0xff] }
 0x139   :  { %v5020_v35 = vcombine.high %v201_v26, %v233_v27 }
 0x13a   :  { %4070 = vmatmul.mubr.bf16.vlgmr.msra.gmra.mrb[28].mxu0 %v5533_v11  ;;  %4111 = vmatmul.mubr.bf16.vlgmr.msra.gmra.mrb[28].mxu1 %v5533_v11 }
 0x13b   :  { %4120 = vmatpush1.bf16.msra.mxu0 %v4887_v52  ;;  %4161 = vmatpush1.bf16.msra.mxu1 %v4889_v53  ;;  %v520_v53 = vld [vmem:[#allocation5 + $0xe88] sm:$0xff] }
 0x13c   :  { %4121 = vmatprep.subr.bf16.mxu0 %v4952_v54  ;;  %4162 = vmatprep.subr.bf16.mxu1 %v4954_v55  ;;  %v552_v54 = vld [vmem:[#allocation5 + $0xf88] sm:$0xff] }
 0x13d   :  { %4151 = vmatprep.mubr.bf16.mxu0 %v5473_v0  ;;  %4192 = vmatprep.mubr.bf16.mxu1 %v5473_v0  ;;  %v5338_v7 = vcombine.high %v520_v53, %v552_v54 }
 0x13f   :  { %4122 = vmatpush1.bf16.msra.mxu0 %v4951_v61  ;;  %4163 = vmatpush1.bf16.msra.mxu1 %v4953_v2 }
 0x140   :  { %4123 = vmatprep.subr.bf16.mxu0 %v5016_v4  ;;  %4164 = vmatprep.subr.bf16.mxu1 %v5018_v5  ;;  %v5273_v4 = vcombine.low %v456_v38, %v488_v39  ;;  %v5336_v5 = vcombine.high %v519_v47, %v551_v48  ;;  %v297_v38 = vld [vmem:[#allocation5 + $0x790] sm:$0xff]  ;;  %v266_v39 = vld [vmem:[#allocation5 + $0x698] sm:$0xff] }
 0x143   :  { %4124 = vmatpush1.bf16.msra.mxu0 %v5015_v10  ;;  %4165 = vmatpush1.bf16.msra.mxu1 %v5017_v12  ;;  %v74_v10 = vld [vmem:[#allocation5 + $0x98] sm:$0xff] }
 0x144   :  { %4125 = vmatprep.subr.bf16.mxu0 %v5080_v13  ;;  %4166 = vmatprep.subr.bf16.mxu1 %v5082_v14  ;;  %v106_v12 = vld [vmem:[#allocation5 + $0x198] sm:$0xff]  ;;  %v5335_v13 = vcombine.low %v519_v47, %v551_v48  ;;  %v5337_v14 = vcombine.low %v520_v53, %v552_v54  ;;  %v393_v53 = vld [vmem:[#allocation5 + $0xa90] sm:$0xff] }
 0x145   :  { %v4894_v16 = vcombine.high %v74_v10, %v106_v12  ;;  %v362_v47 = vld [vmem:[#allocation5 + $0x998] sm:$0xff]  ;;  %v425_v54 = vld [vmem:[#allocation5 + $0xb90] sm:$0xff] }
 0x147   :  { %4126 = vmatpush1.bf16.msra.mxu0 %v5079_v19  ;;  %4167 = vmatpush1.bf16.msra.mxu1 %v5081_v20  ;;  %v138_v19 = vld [vmem:[#allocation5 + $0x298] sm:$0xff] }
 0x148   :  { %4127 = vmatprep.subr.bf16.mxu0 %v5144_v21  ;;  %4168 = vmatprep.subr.bf16.mxu1 %v5146_v22  ;;  %v170_v20 = vld [vmem:[#allocation5 + $0x398] sm:$0xff]  ;;  %v4891_v21 = vcombine.low %v73_v8, %v105_v9  ;;  %v4893_v22 = vcombine.low %v74_v10, %v106_v12  ;;  %v5211_v10 = vcombine.low %v393_v53, %v425_v54 }
 0x149   :  { %v4958_v24 = vcombine.high %v138_v19, %v170_v20 }
 0x14b   :  { %4128 = vmatpush1.bf16.msra.mxu0 %v5143_v28  ;;  %4169 = vmatpush1.bf16.msra.mxu1 %v5145_v31  ;;  %v202_v28 = vld [vmem:[#allocation5 + $0x498] sm:$0xff] }
 0x14c   :  { %4129 = vmatprep.subr.bf16.mxu0 %v5208_v33  ;;  %4170 = vmatprep.subr.bf16.mxu1 %v5210_v34  ;;  %v234_v31 = vld [vmem:[#allocation5 + $0x598] sm:$0xff]  ;;  %v4955_v33 = vcombine.low %v137_v17, %v169_v18  ;;  %v4957_v34 = vcombine.low %v138_v19, %v170_v20  ;;  %v521_v17 = vld [vmem:[#allocation5 + $0xe90] sm:$0xff] }
 0x14d   :  { %v3579_v45 = vpop.f32.mrb[4].mxu0  ;;  %v3620_v50 = vpop.f32.mrb[4].mxu1  ;;  %v5022_v36 = vcombine.high %v202_v28, %v234_v31  ;;  %v553_v18 = vld [vmem:[#allocation5 + $0xf90] sm:$0xff] }
 0x14e   :  { %v3580_v49 = vadd.f32 %v3579_v45, %v602_v37  ;;  %v3581_v52 = vpop.f32.mrb[5].mxu0  ;;  %v3621_v55 = vadd.f32 %v3620_v50, %v610_v40  ;;  %v3622_v57 = vpop.f32.mrb[5].mxu1  ;;  %v265_v37 = vld [vmem:[#allocation5 + $0x690] sm:$0xff]  ;;  %v298_v40 = vld [vmem:[#allocation5 + $0x798] sm:$0xff] }
 0x14f   :  { %v3582_v56 = vadd.f32 %v3581_v52, %v606_v41  ;;  %v3583_v59 = vpop.f32.mrb[6].mxu0  ;;  %4130 = vmatpush1.bf16.msra.mxu0 %v5207_v42  ;;  %v3623_v62 = vadd.f32 %v3622_v57, %v614_v51  ;;  %v3624_v61 = vpop.f32.mrb[6].mxu1  ;;  %4171 = vmatpush1.bf16.msra.mxu1 %v5209_v43  ;;  %v5019_v41 = vcombine.low %v201_v26, %v233_v27  ;;  %v361_v45 = vld [vmem:[#allocation5 + $0x990] sm:$0xff] }
 0x150   :  { %4779 = vst [vmem:[#allocation8 + $0x20] sm:$0xff] %v3580_v49  ;;  %v3584_v2 = vpop.f32.mrb[7].mxu0  ;;  %4131 = vmatprep.subr.bf16.mxu0 %v5272_v44  ;;  %4781 = vst [vmem:[#allocation8 + $0x30] sm:$0xff] %v3621_v55  ;;  %v3625_v6 = vpop.f32.mrb[7].mxu1  ;;  %4172 = vmatprep.subr.bf16.mxu1 %v5274_v46  ;;  %v5021_v42 = vcombine.low %v202_v28, %v234_v31  ;;  %v5084_v51 = vcombine.high %v265_v37, %v297_v38  ;;  %v329_v44 = vld [vmem:[#allocation5 + $0x890] sm:$0xff]  ;;  %v330_v46 = vld [vmem:[#allocation5 + $0x898] sm:$0xff] }
 0x151   :  { %4780 = vst [vmem:[#allocation8 + $0x28] sm:$0xff] %v3582_v56  ;;  %4782 = vst [vmem:[#allocation8 + $0x38] sm:$0xff] %v3623_v62  ;;  %v5086_v43 = vcombine.high %v266_v39, %v298_v40  ;;  %v5083_v48 = vcombine.low %v265_v37, %v297_v38  ;;  %v5085_v49 = vcombine.low %v266_v39, %v298_v40  ;;  %v394_v55 = vld [vmem:[#allocation5 + $0xa98] sm:$0xff]  ;;  %v5615_v59 = vld [vmem:[#allocation7 + $0x8] sm:$0xff] }
 0x152   :  { %v5148_v50 = vcombine.high %v329_v44, %v361_v45  ;;  %v5150_v52 = vcombine.high %v330_v46, %v362_v47  ;;  %v426_v56 = vld [vmem:[#allocation5 + $0xb98] sm:$0xff]  ;;  %v5147_v57 = vcombine.low %v329_v44, %v361_v45  ;;  %v5212_v62 = vcombine.high %v393_v53, %v425_v54  ;;  %v457_v2 = vld [vmem:[#allocation5 + $0xc90] sm:$0xff]  ;;  %v75_v40 = vld [vmem:[#allocation5 + $0xa0] sm:$0xff] }
 0x153   :  { %4132 = vmatpush1.bf16.msra.mxu0 %v5271_v60  ;;  %4173 = vmatpush1.bf16.msra.mxu1 %v5273_v4  ;;  %v5149_v60 = vcombine.low %v330_v46, %v362_v47  ;;  %v5214_v61 = vcombine.high %v394_v55, %v426_v56  ;;  %v489_v4 = vld [vmem:[#allocation5 + $0xd90] sm:$0xff]  ;;  %v458_v6 = vld [vmem:[#allocation5 + $0xc98] sm:$0xff]  ;;  %v626_v8 = vrot.slane %v5615_v59, %v5571_v63  ;;  %v139_v47 = vld [vmem:[#allocation5 + $0x2a0] sm:$0xff] }
 0x154   :  { %4133 = vmatprep.subr.bf16.mxu0 %v5336_v5  ;;  %4174 = vmatprep.subr.bf16.mxu1 %v5338_v7  ;;  %v618_v5 = vrot.slane %v5615_v59, %v5566_v58  ;;  %v490_v7 = vld [vmem:[#allocation5 + $0xd98] sm:$0xff]  ;;  %v622_v9 = vrot.slane %v5615_v59, %v5574_v1  ;;  %v630_v12 = vrot.slane %v5615_v59, %v5577_v3 }
 0x155   :  { %v5275_v31 = vcombine.low %v457_v2, %v489_v4  ;;  %v5340_v37 = vcombine.high %v521_v17, %v553_v18 }
 0x157   :  { %4134 = vmatpush1.bf16.msra.mxu0 %v5335_v13  ;;  %4175 = vmatpush1.bf16.msra.mxu1 %v5337_v14  ;;  %v5213_v13 = vcombine.low %v394_v55, %v426_v56  ;;  %v5276_v14 = vcombine.high %v457_v2, %v489_v4  ;;  %v203_v56 = vld [vmem:[#allocation5 + $0x4a0] sm:$0xff] }
 0x158   :  { %4201 = vmatprep.subr.bf16.mxu0 %v4892_v15  ;;  %4242 = vmatprep.subr.bf16.mxu1 %v4894_v16  ;;  %v5278_v16 = vcombine.high %v458_v6, %v490_v7 }
 0x15a   :  { %4152 = vmatmul.mubr.bf16.vlgmr.msra.gmra.mrb[32].mxu0 %v5533_v11  ;;  %4193 = vmatmul.mubr.bf16.vlgmr.msra.gmra.mrb[32].mxu1 %v5533_v11 }
 0x15b   :  { %4202 = vmatpush1.bf16.msra.mxu0 %v4891_v21  ;;  %4243 = vmatpush1.bf16.msra.mxu1 %v4893_v22  ;;  %v522_v22 = vld [vmem:[#allocation5 + $0xe98] sm:$0xff] }
 0x15c   :  { %4203 = vmatprep.subr.bf16.mxu0 %v4956_v23  ;;  %4244 = vmatprep.subr.bf16.mxu1 %v4958_v24  ;;  %v554_v23 = vld [vmem:[#allocation5 + $0xf98] sm:$0xff] }
 0x15d   :  { %4233 = vmatprep.mubr.bf16.mxu0 %v5473_v0  ;;  %4274 = vmatprep.mubr.bf16.mxu1 %v5473_v0  ;;  %v5342_v39 = vcombine.high %v522_v22, %v554_v23  ;;  %v5341_v44 = vcombine.low %v522_v22, %v554_v23  ;;  %v395_v23 = vld [vmem:[#allocation5 + $0xaa0] sm:$0xff] }
 0x15f   :  { %4204 = vmatpush1.bf16.msra.mxu0 %v4955_v33  ;;  %4245 = vmatpush1.bf16.msra.mxu1 %v4957_v34 }
 0x160   :  { %4205 = vmatprep.subr.bf16.mxu0 %v5020_v35  ;;  %4246 = vmatprep.subr.bf16.mxu1 %v5022_v36  ;;  %v5277_v36 = vcombine.low %v458_v6, %v490_v7  ;;  %v267_v6 = vld [vmem:[#allocation5 + $0x6a0] sm:$0xff] }
 0x161   :  { %v299_v7 = vld [vmem:[#allocation5 + $0x7a0] sm:$0xff] }
 0x163   :  { %4206 = vmatpush1.bf16.msra.mxu0 %v5019_v41  ;;  %4247 = vmatpush1.bf16.msra.mxu1 %v5021_v42  ;;  %v107_v41 = vld [vmem:[#allocation5 + $0x1a0] sm:$0xff]  ;;  %v76_v42 = vld [vmem:[#allocation5 + $0xa8] sm:$0xff] }
 0x164   :  { %4207 = vmatprep.subr.bf16.mxu0 %v5084_v51  ;;  %4248 = vmatprep.subr.bf16.mxu1 %v5086_v43  ;;  %v108_v51 = vld [vmem:[#allocation5 + $0x1a8] sm:$0xff]  ;;  %v5339_v43 = vcombine.low %v521_v17, %v553_v18  ;;  %v4896_v45 = vcombine.high %v75_v40, %v107_v41 }
 0x165   :  { %v4898_v46 = vcombine.high %v76_v42, %v108_v51  ;;  %v4897_v53 = vcombine.low %v76_v42, %v108_v51  ;;  %v332_v17 = vld [vmem:[#allocation5 + $0x8a8] sm:$0xff]  ;;  %v646_v51 = vrot.slane %v5615_v59, %v5601_v32 }
 0x166   :  { %v364_v18 = vld [vmem:[#allocation5 + $0x9a8] sm:$0xff] }
 0x167   :  { %4208 = vmatpush1.bf16.msra.mxu0 %v5083_v48  ;;  %4249 = vmatpush1.bf16.msra.mxu1 %v5085_v49  ;;  %v171_v48 = vld [vmem:[#allocation5 + $0x3a0] sm:$0xff]  ;;  %v140_v49 = vld [vmem:[#allocation5 + $0x2a8] sm:$0xff]  ;;  %v5154_v22 = vcombine.high %v332_v17, %v364_v18 }
 0x168   :  { %4209 = vmatprep.subr.bf16.mxu0 %v5148_v50  ;;  %4250 = vmatprep.subr.bf16.mxu1 %v5150_v52  ;;  %v172_v50 = vld [vmem:[#allocation5 + $0x3a8] sm:$0xff]  ;;  %v4895_v52 = vcombine.low %v75_v40, %v107_v41  ;;  %v4960_v54 = vcombine.high %v139_v47, %v171_v48  ;;  %v642_v40 = vrot.slane %v5615_v59, %v5595_v29 }
 0x169   :  { %v4962_v55 = vcombine.high %v140_v49, %v172_v50  ;;  %v4961_v2 = vcombine.low %v140_v49, %v172_v50  ;;  %v638_v41 = vrot.slane %v5615_v59, %v5598_v30 }
 0x16b   :  { %4210 = vmatpush1.bf16.msra.mxu0 %v5147_v57  ;;  %4251 = vmatpush1.bf16.msra.mxu1 %v5149_v60  ;;  %v235_v57 = vld [vmem:[#allocation5 + $0x5a0] sm:$0xff]  ;;  %v204_v60 = vld [vmem:[#allocation5 + $0x4a8] sm:$0xff] }
 0x16c   :  { %4211 = vmatprep.subr.bf16.mxu0 %v5212_v62  ;;  %4252 = vmatprep.subr.bf16.mxu1 %v5214_v61  ;;  %v236_v62 = vld [vmem:[#allocation5 + $0x5a8] sm:$0xff]  ;;  %v4959_v61 = vcombine.low %v139_v47, %v171_v48  ;;  %v5024_v4 = vcombine.high %v203_v56, %v235_v57  ;;  %v523_v47 = vld [vmem:[#allocation5 + $0xea0] sm:$0xff] }
 0x16d   :  { %v3661_v15 = vpop.f32.mrb[8].mxu0  ;;  %v3702_v20 = vpop.f32.mrb[8].mxu1  ;;  %v555_v48 = vld [vmem:[#allocation5 + $0xfa0] sm:$0xff] }
 0x16e   :  { %v3662_v19 = vadd.f32 %v3661_v15, %v618_v5  ;;  %v3663_v21 = vpop.f32.mrb[9].mxu0  ;;  %v3703_v24 = vadd.f32 %v3702_v20, %v626_v8  ;;  %v3704_v27 = vpop.f32.mrb[9].mxu1  ;;  %v5026_v5 = vcombine.high %v204_v60, %v236_v62  ;;  %v268_v8 = vld [vmem:[#allocation5 + $0x6a8] sm:$0xff]  ;;  %v331_v15 = vld [vmem:[#allocation5 + $0x8a0] sm:$0xff] }
 0x16f   :  { %v3664_v26 = vadd.f32 %v3663_v21, %v622_v9  ;;  %v3665_v28 = vpop.f32.mrb[10].mxu0  ;;  %4212 = vmatpush1.bf16.msra.mxu0 %v5211_v10  ;;  %v3705_v33 = vadd.f32 %v3704_v27, %v630_v12  ;;  %v3706_v34 = vpop.f32.mrb[10].mxu1  ;;  %4253 = vmatpush1.bf16.msra.mxu1 %v5213_v13  ;;  %v300_v9 = vld [vmem:[#allocation5 + $0x7a8] sm:$0xff]  ;;  %v5023_v10 = vcombine.low %v203_v56, %v235_v57 }
 0x170   :  { %4783 = vst [vmem:[#allocation8 + $0x40] sm:$0xff] %v3662_v19  ;;  %v3666_v35 = vpop.f32.mrb[11].mxu0  ;;  %4213 = vmatprep.subr.bf16.mxu0 %v5276_v14  ;;  %4785 = vst [vmem:[#allocation8 + $0x50] sm:$0xff] %v3703_v24  ;;  %v3707_v38 = vpop.f32.mrb[11].mxu1  ;;  %4254 = vmatprep.subr.bf16.mxu1 %v5278_v16  ;;  %v5025_v12 = vcombine.low %v204_v60, %v236_v62  ;;  %v5088_v13 = vcombine.high %v267_v6, %v299_v7  ;;  %v363_v16 = vld [vmem:[#allocation5 + $0x9a0] sm:$0xff]  ;;  %v428_v27 = vld [vmem:[#allocation5 + $0xba8] sm:$0xff] }
 0x171   :  { %4784 = vst [vmem:[#allocation8 + $0x48] sm:$0xff] %v3664_v26  ;;  %4786 = vst [vmem:[#allocation8 + $0x58] sm:$0xff] %v3705_v33  ;;  %v5090_v14 = vcombine.high %v268_v8, %v300_v9  ;;  %v5087_v19 = vcombine.low %v267_v6, %v299_v7  ;;  %v5089_v20 = vcombine.low %v268_v8, %v300_v9  ;;  %v427_v24 = vld [vmem:[#allocation5 + $0xba0] sm:$0xff]  ;;  %v396_v26 = vld [vmem:[#allocation5 + $0xaa8] sm:$0xff] }
 0x172   :  { %v5152_v21 = vcombine.high %v331_v15, %v363_v16  ;;  %v5151_v28 = vcombine.low %v331_v15, %v363_v16  ;;  %v5216_v33 = vcombine.high %v395_v23, %v427_v24  ;;  %v5218_v34 = vcombine.high %v396_v26, %v428_v27  ;;  %v459_v35 = vld [vmem:[#allocation5 + $0xca0] sm:$0xff]  ;;  %v460_v38 = vld [vmem:[#allocation5 + $0xca8] sm:$0xff]  ;;  %v77_v8 = vld [vmem:[#allocation5 + $0xb0] sm:$0xff] }
 0x173   :  { %4214 = vmatpush1.bf16.msra.mxu0 %v5275_v31  ;;  %4255 = vmatpush1.bf16.msra.mxu1 %v5277_v36  ;;  %v5153_v31 = vcombine.low %v332_v17, %v364_v18  ;;  %v491_v36 = vld [vmem:[#allocation5 + $0xda0] sm:$0xff]  ;;  %v5215_v42 = vcombine.low %v395_v23, %v427_v24  ;;  %v109_v9 = vld [vmem:[#allocation5 + $0x1b0] sm:$0xff] }
 0x174   :  { %4215 = vmatprep.subr.bf16.mxu0 %v5340_v37  ;;  %4256 = vmatprep.subr.bf16.mxu1 %v5342_v39  ;;  %v634_v37 = vrot.slane %v5615_v59, %v5592_v25  ;;  %v492_v39 = vld [vmem:[#allocation5 + $0xda8] sm:$0xff]  ;;  %v5279_v62 = vcombine.low %v459_v35, %v491_v36  ;;  %v4900_v15 = vcombine.high %v77_v8, %v109_v9  ;;  %v141_v17 = vld [vmem:[#allocation5 + $0x2b0] sm:$0xff] }
 0x175   :  { %v173_v18 = vld [vmem:[#allocation5 + $0x3b0] sm:$0xff] }
 0x176   :  { %v4964_v23 = vcombine.high %v141_v17, %v173_v18 }
 0x177   :  { %4216 = vmatpush1.bf16.msra.mxu0 %v5339_v43  ;;  %4257 = vmatpush1.bf16.msra.mxu1 %v5341_v44  ;;  %v5217_v43 = vcombine.low %v396_v26, %v428_v27  ;;  %v5280_v44 = vcombine.high %v459_v35, %v491_v36  ;;  %v205_v26 = vld [vmem:[#allocation5 + $0x4b0] sm:$0xff] }
 0x178   :  { %4283 = vmatprep.subr.bf16.mxu0 %v4896_v45  ;;  %4324 = vmatprep.subr.bf16.mxu1 %v4898_v46  ;;  %v5282_v46 = vcombine.high %v460_v38, %v492_v39  ;;  %v237_v27 = vld [vmem:[#allocation5 + $0x5b0] sm:$0xff] }
 0x179   :  { %v5028_v35 = vcombine.high %v205_v26, %v237_v27 }
 0x17a   :  { %4234 = vmatmul.mubr.bf16.vlgmr.msra.gmra.mrb[36].mxu0 %v5533_v11  ;;  %4275 = vmatmul.mubr.bf16.vlgmr.msra.gmra.mrb[36].mxu1 %v5533_v11 }
 0x17b   :  { %4284 = vmatpush1.bf16.msra.mxu0 %v4895_v52  ;;  %4325 = vmatpush1.bf16.msra.mxu1 %v4897_v53  ;;  %v524_v53 = vld [vmem:[#allocation5 + $0xea8] sm:$0xff] }
 0x17c   :  { %4285 = vmatprep.subr.bf16.mxu0 %v4960_v54  ;;  %4326 = vmatprep.subr.bf16.mxu1 %v4962_v55  ;;  %v556_v54 = vld [vmem:[#allocation5 + $0xfa8] sm:$0xff] }
 0x17d   :  { %4315 = vmatprep.mubr.bf16.mxu0 %v5473_v0  ;;  %4356 = vmatprep.mubr.bf16.mxu1 %v5473_v0  ;;  %v5346_v7 = vcombine.high %v524_v53, %v556_v54 }
 0x17f   :  { %4286 = vmatpush1.bf16.msra.mxu0 %v4959_v61  ;;  %4327 = vmatpush1.bf16.msra.mxu1 %v4961_v2 }
 0x180   :  { %4287 = vmatprep.subr.bf16.mxu0 %v5024_v4  ;;  %4328 = vmatprep.subr.bf16.mxu1 %v5026_v5  ;;  %v5281_v4 = vcombine.low %v460_v38, %v492_v39  ;;  %v5344_v5 = vcombine.high %v523_v47, %v555_v48  ;;  %v301_v38 = vld [vmem:[#allocation5 + $0x7b0] sm:$0xff]  ;;  %v270_v39 = vld [vmem:[#allocation5 + $0x6b8] sm:$0xff] }
 0x183   :  { %4288 = vmatpush1.bf16.msra.mxu0 %v5023_v10  ;;  %4329 = vmatpush1.bf16.msra.mxu1 %v5025_v12  ;;  %v78_v10 = vld [vmem:[#allocation5 + $0xb8] sm:$0xff] }
 0x184   :  { %4289 = vmatprep.subr.bf16.mxu0 %v5088_v13  ;;  %4330 = vmatprep.subr.bf16.mxu1 %v5090_v14  ;;  %v110_v12 = vld [vmem:[#allocation5 + $0x1b8] sm:$0xff]  ;;  %v5343_v13 = vcombine.low %v523_v47, %v555_v48  ;;  %v5345_v14 = vcombine.low %v524_v53, %v556_v54  ;;  %v397_v53 = vld [vmem:[#allocation5 + $0xab0] sm:$0xff] }
 0x185   :  { %v4902_v16 = vcombine.high %v78_v10, %v110_v12  ;;  %v366_v47 = vld [vmem:[#allocation5 + $0x9b8] sm:$0xff]  ;;  %v429_v54 = vld [vmem:[#allocation5 + $0xbb0] sm:$0xff] }
 0x187   :  { %4290 = vmatpush1.bf16.msra.mxu0 %v5087_v19  ;;  %4331 = vmatpush1.bf16.msra.mxu1 %v5089_v20  ;;  %v142_v19 = vld [vmem:[#allocation5 + $0x2b8] sm:$0xff] }
 0x188   :  { %4291 = vmatprep.subr.bf16.mxu0 %v5152_v21  ;;  %4332 = vmatprep.subr.bf16.mxu1 %v5154_v22  ;;  %v174_v20 = vld [vmem:[#allocation5 + $0x3b8] sm:$0xff]  ;;  %v4899_v21 = vcombine.low %v77_v8, %v109_v9  ;;  %v4901_v22 = vcombine.low %v78_v10, %v110_v12  ;;  %v5219_v10 = vcombine.low %v397_v53, %v429_v54 }
 0x189   :  { %v4966_v24 = vcombine.high %v142_v19, %v174_v20 }
 0x18b   :  { %4292 = vmatpush1.bf16.msra.mxu0 %v5151_v28  ;;  %4333 = vmatpush1.bf16.msra.mxu1 %v5153_v31  ;;  %v206_v28 = vld [vmem:[#allocation5 + $0x4b8] sm:$0xff] }
 0x18c   :  { %4293 = vmatprep.subr.bf16.mxu0 %v5216_v33  ;;  %4334 = vmatprep.subr.bf16.mxu1 %v5218_v34  ;;  %v238_v31 = vld [vmem:[#allocation5 + $0x5b8] sm:$0xff]  ;;  %v4963_v33 = vcombine.low %v141_v17, %v173_v18  ;;  %v4965_v34 = vcombine.low %v142_v19, %v174_v20  ;;  %v525_v17 = vld [vmem:[#allocation5 + $0xeb0] sm:$0xff] }
 0x18d   :  { %v3743_v45 = vpop.f32.mrb[12].mxu0  ;;  %v3784_v50 = vpop.f32.mrb[12].mxu1  ;;  %v5030_v36 = vcombine.high %v206_v28, %v238_v31  ;;  %v557_v18 = vld [vmem:[#allocation5 + $0xfb0] sm:$0xff] }
 0x18e   :  { %v3744_v49 = vadd.f32 %v3743_v45, %v634_v37  ;;  %v3745_v52 = vpop.f32.mrb[13].mxu0  ;;  %v3785_v55 = vadd.f32 %v3784_v50, %v642_v40  ;;  %v3786_v57 = vpop.f32.mrb[13].mxu1  ;;  %v269_v37 = vld [vmem:[#allocation5 + $0x6b0] sm:$0xff]  ;;  %v302_v40 = vld [vmem:[#allocation5 + $0x7b8] sm:$0xff] }
 0x18f   :  { %v3746_v56 = vadd.f32 %v3745_v52, %v638_v41  ;;  %v3747_v60 = vpop.f32.mrb[14].mxu0  ;;  %4294 = vmatpush1.bf16.msra.mxu0 %v5215_v42  ;;  %v3787_v59 = vadd.f32 %v3786_v57, %v646_v51  ;;  %v3788_v61 = vpop.f32.mrb[14].mxu1  ;;  %4335 = vmatpush1.bf16.msra.mxu1 %v5217_v43  ;;  %v5027_v41 = vcombine.low %v205_v26, %v237_v27  ;;  %v365_v45 = vld [vmem:[#allocation5 + $0x9b0] sm:$0xff] }
 0x190   :  { %4787 = vst [vmem:[#allocation8 + $0x60] sm:$0xff] %v3744_v49  ;;  %v3748_v2 = vpop.f32.mrb[15].mxu0  ;;  %4295 = vmatprep.subr.bf16.mxu0 %v5280_v44  ;;  %4789 = vst [vmem:[#allocation8 + $0x70] sm:$0xff] %v3785_v55  ;;  %v3789_v6 = vpop.f32.mrb[15].mxu1  ;;  %4336 = vmatprep.subr.bf16.mxu1 %v5282_v46  ;;  %v5029_v42 = vcombine.low %v206_v28, %v238_v31  ;;  %v5092_v51 = vcombine.high %v269_v37, %v301_v38  ;;  %v333_v44 = vld [vmem:[#allocation5 + $0x8b0] sm:$0xff]  ;;  %v334_v46 = vld [vmem:[#allocation5 + $0x8b8] sm:$0xff] }
 0x191   :  { %4788 = vst [vmem:[#allocation8 + $0x68] sm:$0xff] %v3746_v56  ;;  %4790 = vst [vmem:[#allocation8 + $0x78] sm:$0xff] %v3787_v59  ;;  %v5094_v43 = vcombine.high %v270_v39, %v302_v40  ;;  %v5091_v48 = vcombine.low %v269_v37, %v301_v38  ;;  %v5093_v49 = vcombine.low %v270_v39, %v302_v40  ;;  %v398_v55 = vld [vmem:[#allocation5 + $0xab8] sm:$0xff]  ;;  %v5641_v60 = vld [vmem:[#allocation7 + $0x10] sm:$0xff] }
 0x192   :  { %v5156_v50 = vcombine.high %v333_v44, %v365_v45  ;;  %v5158_v52 = vcombine.high %v334_v46, %v366_v47  ;;  %v430_v56 = vld [vmem:[#allocation5 + $0xbb8] sm:$0xff]  ;;  %v5155_v57 = vcombine.low %v333_v44, %v365_v45  ;;  %v5220_v59 = vcombine.high %v397_v53, %v429_v54  ;;  %v461_v2 = vld [vmem:[#allocation5 + $0xcb0] sm:$0xff]  ;;  %v79_v40 = vld [vmem:[#allocation5 + $0xc0] sm:$0xff] }
 0x193   :  { %4296 = vmatpush1.bf16.msra.mxu0 %v5279_v62  ;;  %4337 = vmatpush1.bf16.msra.mxu1 %v5281_v4  ;;  %v5157_v62 = vcombine.low %v334_v46, %v366_v47  ;;  %v5222_v61 = vcombine.high %v398_v55, %v430_v56  ;;  %v493_v4 = vld [vmem:[#allocation5 + $0xdb0] sm:$0xff]  ;;  %v462_v6 = vld [vmem:[#allocation5 + $0xcb8] sm:$0xff]  ;;  %v658_v8 = vrot.slane %v5641_v60, %v5571_v63  ;;  %v143_v47 = vld [vmem:[#allocation5 + $0x2c0] sm:$0xff] }
 0x194   :  { %4297 = vmatprep.subr.bf16.mxu0 %v5344_v5  ;;  %4338 = vmatprep.subr.bf16.mxu1 %v5346_v7  ;;  %v650_v5 = vrot.slane %v5641_v60, %v5566_v58  ;;  %v494_v7 = vld [vmem:[#allocation5 + $0xdb8] sm:$0xff]  ;;  %v654_v9 = vrot.slane %v5641_v60, %v5574_v1  ;;  %v662_v12 = vrot.slane %v5641_v60, %v5577_v3 }
 0x195   :  { %v5283_v31 = vcombine.low %v461_v2, %v493_v4  ;;  %v5348_v37 = vcombine.high %v525_v17, %v557_v18 }
 0x197   :  { %4298 = vmatpush1.bf16.msra.mxu0 %v5343_v13  ;;  %4339 = vmatpush1.bf16.msra.mxu1 %v5345_v14  ;;  %v5221_v13 = vcombine.low %v398_v55, %v430_v56  ;;  %v5284_v14 = vcombine.high %v461_v2, %v493_v4  ;;  %v207_v56 = vld [vmem:[#allocation5 + $0x4c0] sm:$0xff] }
 0x198   :  { %4365 = vmatprep.subr.bf16.mxu0 %v4900_v15  ;;  %4406 = vmatprep.subr.bf16.mxu1 %v4902_v16  ;;  %v5286_v16 = vcombine.high %v462_v6, %v494_v7 }
 0x19a   :  { %4316 = vmatmul.mubr.bf16.vlgmr.msra.gmra.mrb[40].mxu0 %v5533_v11  ;;  %4357 = vmatmul.mubr.bf16.vlgmr.msra.gmra.mrb[40].mxu1 %v5533_v11 }
 0x19b   :  { %4366 = vmatpush1.bf16.msra.mxu0 %v4899_v21  ;;  %4407 = vmatpush1.bf16.msra.mxu1 %v4901_v22  ;;  %v526_v22 = vld [vmem:[#allocation5 + $0xeb8] sm:$0xff] }
 0x19c   :  { %4367 = vmatprep.subr.bf16.mxu0 %v4964_v23  ;;  %4408 = vmatprep.subr.bf16.mxu1 %v4966_v24  ;;  %v558_v23 = vld [vmem:[#allocation5 + $0xfb8] sm:$0xff] }
 0x19d   :  { %4397 = vmatprep.mubr.bf16.mxu0 %v5473_v0  ;;  %4438 = vmatprep.mubr.bf16.mxu1 %v5473_v0  ;;  %v5350_v39 = vcombine.high %v526_v22, %v558_v23  ;;  %v5349_v44 = vcombine.low %v526_v22, %v558_v23  ;;  %v399_v23 = vld [vmem:[#allocation5 + $0xac0] sm:$0xff] }
 0x19f   :  { %4368 = vmatpush1.bf16.msra.mxu0 %v4963_v33  ;;  %4409 = vmatpush1.bf16.msra.mxu1 %v4965_v34 }
 0x1a0   :  { %4369 = vmatprep.subr.bf16.mxu0 %v5028_v35  ;;  %4410 = vmatprep.subr.bf16.mxu1 %v5030_v36  ;;  %v5285_v36 = vcombine.low %v462_v6, %v494_v7  ;;  %v271_v6 = vld [vmem:[#allocation5 + $0x6c0] sm:$0xff] }
 0x1a1   :  { %v303_v7 = vld [vmem:[#allocation5 + $0x7c0] sm:$0xff] }
 0x1a3   :  { %4370 = vmatpush1.bf16.msra.mxu0 %v5027_v41  ;;  %4411 = vmatpush1.bf16.msra.mxu1 %v5029_v42  ;;  %v111_v41 = vld [vmem:[#allocation5 + $0x1c0] sm:$0xff]  ;;  %v80_v42 = vld [vmem:[#allocation5 + $0xc8] sm:$0xff] }
 0x1a4   :  { %4371 = vmatprep.subr.bf16.mxu0 %v5092_v51  ;;  %4412 = vmatprep.subr.bf16.mxu1 %v5094_v43  ;;  %v112_v51 = vld [vmem:[#allocation5 + $0x1c8] sm:$0xff]  ;;  %v5347_v43 = vcombine.low %v525_v17, %v557_v18  ;;  %v4904_v45 = vcombine.high %v79_v40, %v111_v41 }
 0x1a5   :  { %v4906_v46 = vcombine.high %v80_v42, %v112_v51  ;;  %v4905_v53 = vcombine.low %v80_v42, %v112_v51  ;;  %v336_v17 = vld [vmem:[#allocation5 + $0x8c8] sm:$0xff]  ;;  %v678_v51 = vrot.slane %v5641_v60, %v5601_v32 }
 0x1a6   :  { %v368_v18 = vld [vmem:[#allocation5 + $0x9c8] sm:$0xff] }
 0x1a7   :  { %4372 = vmatpush1.bf16.msra.mxu0 %v5091_v48  ;;  %4413 = vmatpush1.bf16.msra.mxu1 %v5093_v49  ;;  %v175_v48 = vld [vmem:[#allocation5 + $0x3c0] sm:$0xff]  ;;  %v144_v49 = vld [vmem:[#allocation5 + $0x2c8] sm:$0xff]  ;;  %v5162_v22 = vcombine.high %v336_v17, %v368_v18 }
 0x1a8   :  { %4373 = vmatprep.subr.bf16.mxu0 %v5156_v50  ;;  %4414 = vmatprep.subr.bf16.mxu1 %v5158_v52  ;;  %v176_v50 = vld [vmem:[#allocation5 + $0x3c8] sm:$0xff]  ;;  %v4903_v52 = vcombine.low %v79_v40, %v111_v41  ;;  %v4968_v54 = vcombine.high %v143_v47, %v175_v48  ;;  %v674_v40 = vrot.slane %v5641_v60, %v5595_v29 }
 0x1a9   :  { %v4970_v55 = vcombine.high %v144_v49, %v176_v50  ;;  %v4969_v2 = vcombine.low %v144_v49, %v176_v50  ;;  %v670_v41 = vrot.slane %v5641_v60, %v5598_v30 }
 0x1ab   :  { %4374 = vmatpush1.bf16.msra.mxu0 %v5155_v57  ;;  %4415 = vmatpush1.bf16.msra.mxu1 %v5157_v62  ;;  %v239_v57 = vld [vmem:[#allocation5 + $0x5c0] sm:$0xff]  ;;  %v208_v62 = vld [vmem:[#allocation5 + $0x4c8] sm:$0xff] }
 0x1ac   :  { %4375 = vmatprep.subr.bf16.mxu0 %v5220_v59  ;;  %4416 = vmatprep.subr.bf16.mxu1 %v5222_v61  ;;  %v240_v59 = vld [vmem:[#allocation5 + $0x5c8] sm:$0xff]  ;;  %v4967_v61 = vcombine.low %v143_v47, %v175_v48  ;;  %v5032_v4 = vcombine.high %v207_v56, %v239_v57  ;;  %v527_v47 = vld [vmem:[#allocation5 + $0xec0] sm:$0xff] }
 0x1ad   :  { %v3825_v15 = vpop.f32.mrb[16].mxu0  ;;  %v3866_v20 = vpop.f32.mrb[16].mxu1  ;;  %v559_v48 = vld [vmem:[#allocation5 + $0xfc0] sm:$0xff] }
 0x1ae   :  { %v3826_v19 = vadd.f32 %v3825_v15, %v650_v5  ;;  %v3827_v21 = vpop.f32.mrb[17].mxu0  ;;  %v3867_v24 = vadd.f32 %v3866_v20, %v658_v8  ;;  %v3868_v27 = vpop.f32.mrb[17].mxu1  ;;  %v5034_v5 = vcombine.high %v208_v62, %v240_v59  ;;  %v272_v8 = vld [vmem:[#allocation5 + $0x6c8] sm:$0xff]  ;;  %v335_v15 = vld [vmem:[#allocation5 + $0x8c0] sm:$0xff] }
 0x1af   :  { %v3828_v26 = vadd.f32 %v3827_v21, %v654_v9  ;;  %v3829_v28 = vpop.f32.mrb[18].mxu0  ;;  %4376 = vmatpush1.bf16.msra.mxu0 %v5219_v10  ;;  %v3869_v33 = vadd.f32 %v3868_v27, %v662_v12  ;;  %v3870_v34 = vpop.f32.mrb[18].mxu1  ;;  %4417 = vmatpush1.bf16.msra.mxu1 %v5221_v13  ;;  %v304_v9 = vld [vmem:[#allocation5 + $0x7c8] sm:$0xff]  ;;  %v5031_v10 = vcombine.low %v207_v56, %v239_v57 }
 0x1b0   :  { %4791 = vst [vmem:[#allocation8 + $0x80] sm:$0xff] %v3826_v19  ;;  %v3830_v35 = vpop.f32.mrb[19].mxu0  ;;  %4377 = vmatprep.subr.bf16.mxu0 %v5284_v14  ;;  %4793 = vst [vmem:[#allocation8 + $0x90] sm:$0xff] %v3867_v24  ;;  %v3871_v38 = vpop.f32.mrb[19].mxu1  ;;  %4418 = vmatprep.subr.bf16.mxu1 %v5286_v16  ;;  %v5033_v12 = vcombine.low %v208_v62, %v240_v59  ;;  %v5096_v13 = vcombine.high %v271_v6, %v303_v7  ;;  %v367_v16 = vld [vmem:[#allocation5 + $0x9c0] sm:$0xff]  ;;  %v432_v27 = vld [vmem:[#allocation5 + $0xbc8] sm:$0xff] }
 0x1b1   :  { %4792 = vst [vmem:[#allocation8 + $0x88] sm:$0xff] %v3828_v26  ;;  %4794 = vst [vmem:[#allocation8 + $0x98] sm:$0xff] %v3869_v33  ;;  %v5098_v14 = vcombine.high %v272_v8, %v304_v9  ;;  %v5095_v19 = vcombine.low %v271_v6, %v303_v7  ;;  %v5097_v20 = vcombine.low %v272_v8, %v304_v9  ;;  %v431_v24 = vld [vmem:[#allocation5 + $0xbc0] sm:$0xff]  ;;  %v400_v26 = vld [vmem:[#allocation5 + $0xac8] sm:$0xff] }
 0x1b2   :  { %v5160_v21 = vcombine.high %v335_v15, %v367_v16  ;;  %v5159_v28 = vcombine.low %v335_v15, %v367_v16  ;;  %v5224_v33 = vcombine.high %v399_v23, %v431_v24  ;;  %v5226_v34 = vcombine.high %v400_v26, %v432_v27  ;;  %v463_v35 = vld [vmem:[#allocation5 + $0xcc0] sm:$0xff]  ;;  %v464_v38 = vld [vmem:[#allocation5 + $0xcc8] sm:$0xff]  ;;  %v81_v8 = vld [vmem:[#allocation5 + $0xd0] sm:$0xff] }
 0x1b3   :  { %4378 = vmatpush1.bf16.msra.mxu0 %v5283_v31  ;;  %4419 = vmatpush1.bf16.msra.mxu1 %v5285_v36  ;;  %v5161_v31 = vcombine.low %v336_v17, %v368_v18  ;;  %v495_v36 = vld [vmem:[#allocation5 + $0xdc0] sm:$0xff]  ;;  %v5223_v42 = vcombine.low %v399_v23, %v431_v24  ;;  %v113_v9 = vld [vmem:[#allocation5 + $0x1d0] sm:$0xff] }
 0x1b4   :  { %4379 = vmatprep.subr.bf16.mxu0 %v5348_v37  ;;  %4420 = vmatprep.subr.bf16.mxu1 %v5350_v39  ;;  %v666_v37 = vrot.slane %v5641_v60, %v5592_v25  ;;  %v496_v39 = vld [vmem:[#allocation5 + $0xdc8] sm:$0xff]  ;;  %v5287_v59 = vcombine.low %v463_v35, %v495_v36  ;;  %v4908_v15 = vcombine.high %v81_v8, %v113_v9  ;;  %v145_v17 = vld [vmem:[#allocation5 + $0x2d0] sm:$0xff] }
 0x1b5   :  { %v177_v18 = vld [vmem:[#allocation5 + $0x3d0] sm:$0xff] }
 0x1b6   :  { %v4972_v23 = vcombine.high %v145_v17, %v177_v18 }
 0x1b7   :  { %4380 = vmatpush1.bf16.msra.mxu0 %v5347_v43  ;;  %4421 = vmatpush1.bf16.msra.mxu1 %v5349_v44  ;;  %v5225_v43 = vcombine.low %v400_v26, %v432_v27  ;;  %v5288_v44 = vcombine.high %v463_v35, %v495_v36  ;;  %v209_v26 = vld [vmem:[#allocation5 + $0x4d0] sm:$0xff] }
 0x1b8   :  { %4447 = vmatprep.subr.bf16.mxu0 %v4904_v45  ;;  %4488 = vmatprep.subr.bf16.mxu1 %v4906_v46  ;;  %v5290_v46 = vcombine.high %v464_v38, %v496_v39  ;;  %v241_v27 = vld [vmem:[#allocation5 + $0x5d0] sm:$0xff] }
 0x1b9   :  { %v5036_v35 = vcombine.high %v209_v26, %v241_v27 }
 0x1ba   :  { %4398 = vmatmul.mubr.bf16.vlgmr.msra.gmra.mrb[44].mxu0 %v5533_v11  ;;  %4439 = vmatmul.mubr.bf16.vlgmr.msra.gmra.mrb[44].mxu1 %v5533_v11 }
 0x1bb   :  { %4448 = vmatpush1.bf16.msra.mxu0 %v4903_v52  ;;  %4489 = vmatpush1.bf16.msra.mxu1 %v4905_v53  ;;  %v528_v53 = vld [vmem:[#allocation5 + $0xec8] sm:$0xff] }
 0x1bc   :  { %4449 = vmatprep.subr.bf16.mxu0 %v4968_v54  ;;  %4490 = vmatprep.subr.bf16.mxu1 %v4970_v55  ;;  %v560_v54 = vld [vmem:[#allocation5 + $0xfc8] sm:$0xff] }
 0x1bd   :  { %4479 = vmatprep.mubr.bf16.mxu0 %v5473_v0  ;;  %4520 = vmatprep.mubr.bf16.mxu1 %v5473_v0  ;;  %v5354_v7 = vcombine.high %v528_v53, %v560_v54 }
 0x1bf   :  { %4450 = vmatpush1.bf16.msra.mxu0 %v4967_v61  ;;  %4491 = vmatpush1.bf16.msra.mxu1 %v4969_v2 }
 0x1c0   :  { %4451 = vmatprep.subr.bf16.mxu0 %v5032_v4  ;;  %4492 = vmatprep.subr.bf16.mxu1 %v5034_v5  ;;  %v5289_v4 = vcombine.low %v464_v38, %v496_v39  ;;  %v5352_v5 = vcombine.high %v527_v47, %v559_v48  ;;  %v305_v38 = vld [vmem:[#allocation5 + $0x7d0] sm:$0xff]  ;;  %v274_v39 = vld [vmem:[#allocation5 + $0x6d8] sm:$0xff] }
 0x1c3   :  { %4452 = vmatpush1.bf16.msra.mxu0 %v5031_v10  ;;  %4493 = vmatpush1.bf16.msra.mxu1 %v5033_v12  ;;  %v82_v10 = vld [vmem:[#allocation5 + $0xd8] sm:$0xff] }
 0x1c4   :  { %4453 = vmatprep.subr.bf16.mxu0 %v5096_v13  ;;  %4494 = vmatprep.subr.bf16.mxu1 %v5098_v14  ;;  %v114_v12 = vld [vmem:[#allocation5 + $0x1d8] sm:$0xff]  ;;  %v5351_v13 = vcombine.low %v527_v47, %v559_v48  ;;  %v5353_v14 = vcombine.low %v528_v53, %v560_v54  ;;  %v401_v53 = vld [vmem:[#allocation5 + $0xad0] sm:$0xff] }
 0x1c5   :  { %v4910_v16 = vcombine.high %v82_v10, %v114_v12  ;;  %v370_v47 = vld [vmem:[#allocation5 + $0x9d8] sm:$0xff]  ;;  %v433_v54 = vld [vmem:[#allocation5 + $0xbd0] sm:$0xff] }
 0x1c7   :  { %4454 = vmatpush1.bf16.msra.mxu0 %v5095_v19  ;;  %4495 = vmatpush1.bf16.msra.mxu1 %v5097_v20  ;;  %v146_v19 = vld [vmem:[#allocation5 + $0x2d8] sm:$0xff] }
 0x1c8   :  { %4455 = vmatprep.subr.bf16.mxu0 %v5160_v21  ;;  %4496 = vmatprep.subr.bf16.mxu1 %v5162_v22  ;;  %v178_v20 = vld [vmem:[#allocation5 + $0x3d8] sm:$0xff]  ;;  %v4907_v21 = vcombine.low %v81_v8, %v113_v9  ;;  %v4909_v22 = vcombine.low %v82_v10, %v114_v12  ;;  %v5227_v10 = vcombine.low %v401_v53, %v433_v54 }
 0x1c9   :  { %v4974_v24 = vcombine.high %v146_v19, %v178_v20 }
 0x1cb   :  { %4456 = vmatpush1.bf16.msra.mxu0 %v5159_v28  ;;  %4497 = vmatpush1.bf16.msra.mxu1 %v5161_v31  ;;  %v210_v28 = vld [vmem:[#allocation5 + $0x4d8] sm:$0xff] }
 0x1cc   :  { %4457 = vmatprep.subr.bf16.mxu0 %v5224_v33  ;;  %4498 = vmatprep.subr.bf16.mxu1 %v5226_v34  ;;  %v242_v31 = vld [vmem:[#allocation5 + $0x5d8] sm:$0xff]  ;;  %v4971_v33 = vcombine.low %v145_v17, %v177_v18  ;;  %v4973_v34 = vcombine.low %v146_v19, %v178_v20  ;;  %v529_v17 = vld [vmem:[#allocation5 + $0xed0] sm:$0xff] }
 0x1cd   :  { %v3907_v45 = vpop.f32.mrb[20].mxu0  ;;  %v3948_v50 = vpop.f32.mrb[20].mxu1  ;;  %v5038_v36 = vcombine.high %v210_v28, %v242_v31  ;;  %v561_v18 = vld [vmem:[#allocation5 + $0xfd0] sm:$0xff] }
 0x1ce   :  { %v3908_v49 = vadd.f32 %v3907_v45, %v666_v37  ;;  %v3909_v52 = vpop.f32.mrb[21].mxu0  ;;  %v3949_v55 = vadd.f32 %v3948_v50, %v674_v40  ;;  %v3950_v57 = vpop.f32.mrb[21].mxu1  ;;  %v273_v37 = vld [vmem:[#allocation5 + $0x6d0] sm:$0xff]  ;;  %v306_v40 = vld [vmem:[#allocation5 + $0x7d8] sm:$0xff] }
 0x1cf   :  { %v3910_v56 = vadd.f32 %v3909_v52, %v670_v41  ;;  %v3911_v62 = vpop.f32.mrb[22].mxu0  ;;  %4458 = vmatpush1.bf16.msra.mxu0 %v5223_v42  ;;  %v3951_v60 = vadd.f32 %v3950_v57, %v678_v51  ;;  %v3952_v61 = vpop.f32.mrb[22].mxu1  ;;  %4499 = vmatpush1.bf16.msra.mxu1 %v5225_v43  ;;  %v5035_v41 = vcombine.low %v209_v26, %v241_v27  ;;  %v369_v45 = vld [vmem:[#allocation5 + $0x9d0] sm:$0xff] }
 0x1d0   :  { %4795 = vst [vmem:[#allocation8 + $0xa0] sm:$0xff] %v3908_v49  ;;  %v3912_v2 = vpop.f32.mrb[23].mxu0  ;;  %4459 = vmatprep.subr.bf16.mxu0 %v5288_v44  ;;  %4797 = vst [vmem:[#allocation8 + $0xb0] sm:$0xff] %v3949_v55  ;;  %v3953_v6 = vpop.f32.mrb[23].mxu1  ;;  %4500 = vmatprep.subr.bf16.mxu1 %v5290_v46  ;;  %v5037_v42 = vcombine.low %v210_v28, %v242_v31  ;;  %v5100_v51 = vcombine.high %v273_v37, %v305_v38  ;;  %v337_v44 = vld [vmem:[#allocation5 + $0x8d0] sm:$0xff]  ;;  %v338_v46 = vld [vmem:[#allocation5 + $0x8d8] sm:$0xff] }
 0x1d1   :  { %4796 = vst [vmem:[#allocation8 + $0xa8] sm:$0xff] %v3910_v56  ;;  %4798 = vst [vmem:[#allocation8 + $0xb8] sm:$0xff] %v3951_v60  ;;  %v5102_v43 = vcombine.high %v274_v39, %v306_v40  ;;  %v5099_v48 = vcombine.low %v273_v37, %v305_v38  ;;  %v5101_v49 = vcombine.low %v274_v39, %v306_v40  ;;  %v402_v55 = vld [vmem:[#allocation5 + $0xad8] sm:$0xff]  ;;  %v465_v2 = vld [vmem:[#allocation5 + $0xcd0] sm:$0xff] }
 0x1d2   :  { %v5164_v50 = vcombine.high %v337_v44, %v369_v45  ;;  %v5166_v52 = vcombine.high %v338_v46, %v370_v47  ;;  %v434_v56 = vld [vmem:[#allocation5 + $0xbd8] sm:$0xff]  ;;  %v5163_v57 = vcombine.low %v337_v44, %v369_v45  ;;  %v5228_v60 = vcombine.high %v401_v53, %v433_v54  ;;  %v83_v40 = vld [vmem:[#allocation5 + $0xe0] sm:$0xff] }
 0x1d3   :  { %4460 = vmatpush1.bf16.msra.mxu0 %v5287_v59  ;;  %4501 = vmatpush1.bf16.msra.mxu1 %v5289_v4  ;;  %v5667_v62 = vld [vmem:[#allocation7 + $0x18] sm:$0xff]  ;;  %v5165_v59 = vcombine.low %v338_v46, %v370_v47  ;;  %v5230_v61 = vcombine.high %v402_v55, %v434_v56  ;;  %v497_v4 = vld [vmem:[#allocation5 + $0xdd0] sm:$0xff]  ;;  %v5356_v37 = vcombine.high %v529_v17, %v561_v18  ;;  %v147_v47 = vld [vmem:[#allocation5 + $0x2e0] sm:$0xff] }
 0x1d4   :  { %4461 = vmatprep.subr.bf16.mxu0 %v5352_v5  ;;  %4502 = vmatprep.subr.bf16.mxu1 %v5354_v7  ;;  %v682_v5 = vrot.slane %v5667_v62, %v5566_v58  ;;  %v466_v6 = vld [vmem:[#allocation5 + $0xcd8] sm:$0xff]  ;;  %v690_v8 = vrot.slane %v5667_v62, %v5571_v63  ;;  %v686_v9 = vrot.slane %v5667_v62, %v5574_v1 }
 0x1d5   :  { %v498_v7 = vld [vmem:[#allocation5 + $0xdd8] sm:$0xff]  ;;  %v694_v12 = vrot.slane %v5667_v62, %v5577_v3  ;;  %v5291_v31 = vcombine.low %v465_v2, %v497_v4 }
 0x1d7   :  { %4462 = vmatpush1.bf16.msra.mxu0 %v5351_v13  ;;  %4503 = vmatpush1.bf16.msra.mxu1 %v5353_v14  ;;  %v5229_v13 = vcombine.low %v402_v55, %v434_v56  ;;  %v5292_v14 = vcombine.high %v465_v2, %v497_v4  ;;  %v211_v56 = vld [vmem:[#allocation5 + $0x4e0] sm:$0xff] }
 0x1d8   :  { %4529 = vmatprep.subr.bf16.mxu0 %v4908_v15  ;;  %4570 = vmatprep.subr.bf16.mxu1 %v4910_v16  ;;  %v5294_v16 = vcombine.high %v466_v6, %v498_v7 }
 0x1da   :  { %4480 = vmatmul.mubr.bf16.vlgmr.msra.gmra.mrb[48].mxu0 %v5533_v11  ;;  %4521 = vmatmul.mubr.bf16.vlgmr.msra.gmra.mrb[48].mxu1 %v5533_v11 }
 0x1db   :  { %4530 = vmatpush1.bf16.msra.mxu0 %v4907_v21  ;;  %4571 = vmatpush1.bf16.msra.mxu1 %v4909_v22  ;;  %v530_v22 = vld [vmem:[#allocation5 + $0xed8] sm:$0xff] }
 0x1dc   :  { %4531 = vmatprep.subr.bf16.mxu0 %v4972_v23  ;;  %4572 = vmatprep.subr.bf16.mxu1 %v4974_v24  ;;  %v562_v23 = vld [vmem:[#allocation5 + $0xfd8] sm:$0xff] }
 0x1dd   :  { %4561 = vmatprep.mubr.bf16.mxu0 %v5473_v0  ;;  %4602 = vmatprep.mubr.bf16.mxu1 %v5473_v0  ;;  %v5358_v39 = vcombine.high %v530_v22, %v562_v23  ;;  %v5357_v44 = vcombine.low %v530_v22, %v562_v23  ;;  %v403_v23 = vld [vmem:[#allocation5 + $0xae0] sm:$0xff] }
 0x1df   :  { %4532 = vmatpush1.bf16.msra.mxu0 %v4971_v33  ;;  %4573 = vmatpush1.bf16.msra.mxu1 %v4973_v34 }
 0x1e0   :  { %4533 = vmatprep.subr.bf16.mxu0 %v5036_v35  ;;  %4574 = vmatprep.subr.bf16.mxu1 %v5038_v36  ;;  %v5293_v36 = vcombine.low %v466_v6, %v498_v7  ;;  %v275_v6 = vld [vmem:[#allocation5 + $0x6e0] sm:$0xff] }
 0x1e1   :  { %v307_v7 = vld [vmem:[#allocation5 + $0x7e0] sm:$0xff] }
 0x1e3   :  { %4534 = vmatpush1.bf16.msra.mxu0 %v5035_v41  ;;  %4575 = vmatpush1.bf16.msra.mxu1 %v5037_v42  ;;  %v115_v41 = vld [vmem:[#allocation5 + $0x1e0] sm:$0xff]  ;;  %v84_v42 = vld [vmem:[#allocation5 + $0xe8] sm:$0xff] }
 0x1e4   :  { %4535 = vmatprep.subr.bf16.mxu0 %v5100_v51  ;;  %4576 = vmatprep.subr.bf16.mxu1 %v5102_v43  ;;  %v116_v51 = vld [vmem:[#allocation5 + $0x1e8] sm:$0xff]  ;;  %v5355_v43 = vcombine.low %v529_v17, %v561_v18  ;;  %v4912_v45 = vcombine.high %v83_v40, %v115_v41 }
 0x1e5   :  { %v4914_v46 = vcombine.high %v84_v42, %v116_v51  ;;  %v4913_v53 = vcombine.low %v84_v42, %v116_v51  ;;  %v340_v17 = vld [vmem:[#allocation5 + $0x8e8] sm:$0xff]  ;;  %v710_v51 = vrot.slane %v5667_v62, %v5601_v32 }
 0x1e6   :  { %v372_v18 = vld [vmem:[#allocation5 + $0x9e8] sm:$0xff] }
 0x1e7   :  { %4536 = vmatpush1.bf16.msra.mxu0 %v5099_v48  ;;  %4577 = vmatpush1.bf16.msra.mxu1 %v5101_v49  ;;  %v179_v48 = vld [vmem:[#allocation5 + $0x3e0] sm:$0xff]  ;;  %v148_v49 = vld [vmem:[#allocation5 + $0x2e8] sm:$0xff]  ;;  %v5170_v22 = vcombine.high %v340_v17, %v372_v18 }
 0x1e8   :  { %4537 = vmatprep.subr.bf16.mxu0 %v5164_v50  ;;  %4578 = vmatprep.subr.bf16.mxu1 %v5166_v52  ;;  %v180_v50 = vld [vmem:[#allocation5 + $0x3e8] sm:$0xff]  ;;  %v4911_v52 = vcombine.low %v83_v40, %v115_v41  ;;  %v4976_v54 = vcombine.high %v147_v47, %v179_v48  ;;  %v706_v40 = vrot.slane %v5667_v62, %v5595_v29 }
 0x1e9   :  { %v4978_v55 = vcombine.high %v148_v49, %v180_v50  ;;  %v4977_v2 = vcombine.low %v148_v49, %v180_v50  ;;  %v702_v41 = vrot.slane %v5667_v62, %v5598_v30 }
 0x1eb   :  { %4538 = vmatpush1.bf16.msra.mxu0 %v5163_v57  ;;  %4579 = vmatpush1.bf16.msra.mxu1 %v5165_v59  ;;  %v243_v57 = vld [vmem:[#allocation5 + $0x5e0] sm:$0xff]  ;;  %v212_v59 = vld [vmem:[#allocation5 + $0x4e8] sm:$0xff] }
 0x1ec   :  { %4539 = vmatprep.subr.bf16.mxu0 %v5228_v60  ;;  %4580 = vmatprep.subr.bf16.mxu1 %v5230_v61  ;;  %v244_v60 = vld [vmem:[#allocation5 + $0x5e8] sm:$0xff]  ;;  %v4975_v61 = vcombine.low %v147_v47, %v179_v48  ;;  %v5040_v4 = vcombine.high %v211_v56, %v243_v57  ;;  %v531_v47 = vld [vmem:[#allocation5 + $0xee0] sm:$0xff] }
 0x1ed   :  { %v3989_v15 = vpop.f32.mrb[24].mxu0  ;;  %v4030_v20 = vpop.f32.mrb[24].mxu1  ;;  %v563_v48 = vld [vmem:[#allocation5 + $0xfe0] sm:$0xff] }
 0x1ee   :  { %v3990_v19 = vadd.f32 %v3989_v15, %v682_v5  ;;  %v3991_v21 = vpop.f32.mrb[25].mxu0  ;;  %v4031_v24 = vadd.f32 %v4030_v20, %v690_v8  ;;  %v4032_v27 = vpop.f32.mrb[25].mxu1  ;;  %v5042_v5 = vcombine.high %v212_v59, %v244_v60  ;;  %v276_v8 = vld [vmem:[#allocation5 + $0x6e8] sm:$0xff]  ;;  %v339_v15 = vld [vmem:[#allocation5 + $0x8e0] sm:$0xff] }
 0x1ef   :  { %v3992_v26 = vadd.f32 %v3991_v21, %v686_v9  ;;  %v3993_v28 = vpop.f32.mrb[26].mxu0  ;;  %4540 = vmatpush1.bf16.msra.mxu0 %v5227_v10  ;;  %v4033_v33 = vadd.f32 %v4032_v27, %v694_v12  ;;  %v4034_v34 = vpop.f32.mrb[26].mxu1  ;;  %4581 = vmatpush1.bf16.msra.mxu1 %v5229_v13  ;;  %v308_v9 = vld [vmem:[#allocation5 + $0x7e8] sm:$0xff]  ;;  %v5039_v10 = vcombine.low %v211_v56, %v243_v57 }
 0x1f0   :  { %4799 = vst [vmem:[#allocation8 + $0xc0] sm:$0xff] %v3990_v19  ;;  %v3994_v35 = vpop.f32.mrb[27].mxu0  ;;  %4541 = vmatprep.subr.bf16.mxu0 %v5292_v14  ;;  %4801 = vst [vmem:[#allocation8 + $0xd0] sm:$0xff] %v4031_v24  ;;  %v4035_v38 = vpop.f32.mrb[27].mxu1  ;;  %4582 = vmatprep.subr.bf16.mxu1 %v5294_v16  ;;  %v5041_v12 = vcombine.low %v212_v59, %v244_v60  ;;  %v5104_v13 = vcombine.high %v275_v6, %v307_v7  ;;  %v371_v16 = vld [vmem:[#allocation5 + $0x9e0] sm:$0xff]  ;;  %v436_v27 = vld [vmem:[#allocation5 + $0xbe8] sm:$0xff] }
 0x1f1   :  { %4800 = vst [vmem:[#allocation8 + $0xc8] sm:$0xff] %v3992_v26  ;;  %4802 = vst [vmem:[#allocation8 + $0xd8] sm:$0xff] %v4033_v33  ;;  %v5106_v14 = vcombine.high %v276_v8, %v308_v9  ;;  %v5103_v19 = vcombine.low %v275_v6, %v307_v7  ;;  %v5105_v20 = vcombine.low %v276_v8, %v308_v9  ;;  %v435_v24 = vld [vmem:[#allocation5 + $0xbe0] sm:$0xff]  ;;  %v404_v26 = vld [vmem:[#allocation5 + $0xae8] sm:$0xff] }
 0x1f2   :  { %v5168_v21 = vcombine.high %v339_v15, %v371_v16  ;;  %v5167_v28 = vcombine.low %v339_v15, %v371_v16  ;;  %v5232_v33 = vcombine.high %v403_v23, %v435_v24  ;;  %v5234_v34 = vcombine.high %v404_v26, %v436_v27  ;;  %v467_v35 = vld [vmem:[#allocation5 + $0xce0] sm:$0xff]  ;;  %v468_v38 = vld [vmem:[#allocation5 + $0xce8] sm:$0xff]  ;;  %v85_v8 = vld [vmem:[#allocation5 + $0xf0] sm:$0xff] }
 0x1f3   :  { %4542 = vmatpush1.bf16.msra.mxu0 %v5291_v31  ;;  %4583 = vmatpush1.bf16.msra.mxu1 %v5293_v36  ;;  %v5169_v31 = vcombine.low %v340_v17, %v372_v18  ;;  %v499_v36 = vld [vmem:[#allocation5 + $0xde0] sm:$0xff]  ;;  %v5231_v42 = vcombine.low %v403_v23, %v435_v24  ;;  %v117_v9 = vld [vmem:[#allocation5 + $0x1f0] sm:$0xff] }
 0x1f4   :  { %4543 = vmatprep.subr.bf16.mxu0 %v5356_v37  ;;  %4584 = vmatprep.subr.bf16.mxu1 %v5358_v39  ;;  %v698_v37 = vrot.slane %v5667_v62, %v5592_v25  ;;  %v500_v39 = vld [vmem:[#allocation5 + $0xde8] sm:$0xff]  ;;  %v5295_v60 = vcombine.low %v467_v35, %v499_v36  ;;  %v4916_v15 = vcombine.high %v85_v8, %v117_v9  ;;  %v149_v17 = vld [vmem:[#allocation5 + $0x2f0] sm:$0xff] }
 0x1f5   :  { %v181_v18 = vld [vmem:[#allocation5 + $0x3f0] sm:$0xff] }
 0x1f6   :  { %v4980_v23 = vcombine.high %v149_v17, %v181_v18 }
 0x1f7   :  { %4544 = vmatpush1.bf16.msra.mxu0 %v5355_v43  ;;  %4585 = vmatpush1.bf16.msra.mxu1 %v5357_v44  ;;  %v5233_v43 = vcombine.low %v404_v26, %v436_v27  ;;  %v5296_v44 = vcombine.high %v467_v35, %v499_v36  ;;  %v213_v26 = vld [vmem:[#allocation5 + $0x4f0] sm:$0xff] }
 0x1f8   :  { %4611 = vmatprep.subr.bf16.mxu0 %v4912_v45  ;;  %4652 = vmatprep.subr.bf16.mxu1 %v4914_v46  ;;  %v5298_v46 = vcombine.high %v468_v38, %v500_v39  ;;  %v245_v27 = vld [vmem:[#allocation5 + $0x5f0] sm:$0xff] }
 0x1f9   :  { %v5044_v35 = vcombine.high %v213_v26, %v245_v27 }
 0x1fa   :  { %4562 = vmatmul.mubr.bf16.vlgmr.msra.gmra.mrb[52].mxu0 %v5533_v11  ;;  %4603 = vmatmul.mubr.bf16.vlgmr.msra.gmra.mrb[52].mxu1 %v5533_v11 }
 0x1fb   :  { %4612 = vmatpush1.bf16.msra.mxu0 %v4911_v52  ;;  %4653 = vmatpush1.bf16.msra.mxu1 %v4913_v53  ;;  %v532_v53 = vld [vmem:[#allocation5 + $0xee8] sm:$0xff] }
 0x1fc   :  { %4613 = vmatprep.subr.bf16.mxu0 %v4976_v54  ;;  %4654 = vmatprep.subr.bf16.mxu1 %v4978_v55  ;;  %v564_v54 = vld [vmem:[#allocation5 + $0xfe8] sm:$0xff] }
 0x1fd   :  { %4643 = vmatprep.mubr.bf16.mxu0 %v5473_v0  ;;  %4684 = vmatprep.mubr.bf16.mxu1 %v5473_v0  ;;  %v5362_v7 = vcombine.high %v532_v53, %v564_v54 }
 0x1ff   :  { %4614 = vmatpush1.bf16.msra.mxu0 %v4975_v61  ;;  %4655 = vmatpush1.bf16.msra.mxu1 %v4977_v2 }
 0x200   :  { %4615 = vmatprep.subr.bf16.mxu0 %v5040_v4  ;;  %4656 = vmatprep.subr.bf16.mxu1 %v5042_v5  ;;  %v5297_v4 = vcombine.low %v468_v38, %v500_v39  ;;  %v5360_v5 = vcombine.high %v531_v47, %v563_v48  ;;  %v309_v38 = vld [vmem:[#allocation5 + $0x7f0] sm:$0xff]  ;;  %v278_v39 = vld [vmem:[#allocation5 + $0x6f8] sm:$0xff] }
 0x203   :  { %4616 = vmatpush1.bf16.msra.mxu0 %v5039_v10  ;;  %4657 = vmatpush1.bf16.msra.mxu1 %v5041_v12  ;;  %v86_v10 = vld [vmem:[#allocation5 + $0xf8] sm:$0xff] }
 0x204   :  { %4617 = vmatprep.subr.bf16.mxu0 %v5104_v13  ;;  %4658 = vmatprep.subr.bf16.mxu1 %v5106_v14  ;;  %v118_v12 = vld [vmem:[#allocation5 + $0x1f8] sm:$0xff]  ;;  %v5359_v13 = vcombine.low %v531_v47, %v563_v48  ;;  %v5361_v14 = vcombine.low %v532_v53, %v564_v54  ;;  %v437_v53 = vld [vmem:[#allocation5 + $0xbf0] sm:$0xff] }
 0x205   :  { %v4918_v16 = vcombine.high %v86_v10, %v118_v12  ;;  %v374_v47 = vld [vmem:[#allocation5 + $0x9f8] sm:$0xff] }
 0x206   :  { %v406_v54 = vld [vmem:[#allocation5 + $0xaf8] sm:$0xff] }
 0x207   :  { %4618 = vmatpush1.bf16.msra.mxu0 %v5103_v19  ;;  %4659 = vmatpush1.bf16.msra.mxu1 %v5105_v20  ;;  %v150_v19 = vld [vmem:[#allocation5 + $0x2f8] sm:$0xff] }
 0x208   :  { %4619 = vmatprep.subr.bf16.mxu0 %v5168_v21  ;;  %4660 = vmatprep.subr.bf16.mxu1 %v5170_v22  ;;  %v182_v20 = vld [vmem:[#allocation5 + $0x3f8] sm:$0xff]  ;;  %v4915_v21 = vcombine.low %v85_v8, %v117_v9  ;;  %v4917_v22 = vcombine.low %v86_v10, %v118_v12 }
 0x209   :  { %v4982_v24 = vcombine.high %v150_v19, %v182_v20 }
 0x20b   :  { %4620 = vmatpush1.bf16.msra.mxu0 %v5167_v28  ;;  %4661 = vmatpush1.bf16.msra.mxu1 %v5169_v31  ;;  %v214_v28 = vld [vmem:[#allocation5 + $0x4f8] sm:$0xff] }
 0x20c   :  { %4621 = vmatprep.subr.bf16.mxu0 %v5232_v33  ;;  %4662 = vmatprep.subr.bf16.mxu1 %v5234_v34  ;;  %v246_v31 = vld [vmem:[#allocation5 + $0x5f8] sm:$0xff]  ;;  %v4979_v33 = vcombine.low %v149_v17, %v181_v18  ;;  %v4981_v34 = vcombine.low %v150_v19, %v182_v20  ;;  %v565_v17 = vld [vmem:[#allocation5 + $0xff0] sm:$0xff] }
 0x20d   :  { %v4071_v45 = vpop.f32.mrb[28].mxu0  ;;  %v4112_v50 = vpop.f32.mrb[28].mxu1  ;;  %v5046_v36 = vcombine.high %v214_v28, %v246_v31 }
 0x20e   :  { %v4072_v49 = vadd.f32 %v4071_v45, %v698_v37  ;;  %v4073_v52 = vpop.f32.mrb[29].mxu0  ;;  %v4113_v55 = vadd.f32 %v4112_v50, %v706_v40  ;;  %v4114_v57 = vpop.f32.mrb[29].mxu1  ;;  %v277_v37 = vld [vmem:[#allocation5 + $0x6f0] sm:$0xff]  ;;  %v310_v40 = vld [vmem:[#allocation5 + $0x7f8] sm:$0xff] }
 0x20f   :  { %v4074_v56 = vadd.f32 %v4073_v52, %v702_v41  ;;  %v4075_v59 = vpop.f32.mrb[30].mxu0  ;;  %4622 = vmatpush1.bf16.msra.mxu0 %v5231_v42  ;;  %v4115_v62 = vadd.f32 %v4114_v57, %v710_v51  ;;  %v4116_v61 = vpop.f32.mrb[30].mxu1  ;;  %4663 = vmatpush1.bf16.msra.mxu1 %v5233_v43  ;;  %v5043_v41 = vcombine.low %v213_v26, %v245_v27  ;;  %v373_v45 = vld [vmem:[#allocation5 + $0x9f0] sm:$0xff]  ;;  %v5693_v57 = vld [vmem:[#allocation7 + $0x20] sm:$0xff] }
 0x210   :  { %4803 = vst [vmem:[#allocation8 + $0xe0] sm:$0xff] %v4072_v49  ;;  %v4076_v2 = vpop.f32.mrb[31].mxu0  ;;  %4623 = vmatprep.subr.bf16.mxu0 %v5296_v44  ;;  %4805 = vst [vmem:[#allocation8 + $0xf0] sm:$0xff] %v4113_v55  ;;  %v4117_v6 = vpop.f32.mrb[31].mxu1  ;;  %4664 = vmatprep.subr.bf16.mxu1 %v5298_v46  ;;  %v5045_v42 = vcombine.low %v214_v28, %v246_v31  ;;  %v5108_v51 = vcombine.high %v277_v37, %v309_v38  ;;  %v341_v44 = vld [vmem:[#allocation5 + $0x8f0] sm:$0xff]  ;;  %v342_v46 = vld [vmem:[#allocation5 + $0x8f8] sm:$0xff] }
 0x211   :  { %4804 = vst [vmem:[#allocation8 + $0xe8] sm:$0xff] %v4074_v56  ;;  %4806 = vst [vmem:[#allocation8 + $0xf8] sm:$0xff] %v4115_v62  ;;  %v5110_v43 = vcombine.high %v278_v39, %v310_v40  ;;  %v5107_v48 = vcombine.low %v277_v37, %v309_v38  ;;  %v5109_v49 = vcombine.low %v278_v39, %v310_v40  ;;  %v405_v52 = vld [vmem:[#allocation5 + $0xaf0] sm:$0xff]  ;;  %v438_v55 = vld [vmem:[#allocation5 + $0xbf8] sm:$0xff] }
 0x212   :  { %v5172_v50 = vcombine.high %v341_v44, %v373_v45  ;;  %v5171_v56 = vcombine.low %v341_v44, %v373_v45  ;;  %v5173_v59 = vcombine.low %v342_v46, %v374_v47  ;;  %v5238_v62 = vcombine.high %v406_v54, %v438_v55  ;;  %v469_v61 = vld [vmem:[#allocation5 + $0xcf0] sm:$0xff]  ;;  %v502_v6 = vld [vmem:[#allocation5 + $0xdf8] sm:$0xff] }
 0x213   :  { %4624 = vmatpush1.bf16.msra.mxu0 %v5295_v60  ;;  %4665 = vmatpush1.bf16.msra.mxu1 %v5297_v4  ;;  %v5236_v60 = vcombine.high %v405_v52, %v437_v53  ;;  %v501_v2 = vld [vmem:[#allocation5 + $0xdf0] sm:$0xff]  ;;  %v714_v4 = vrot.slane %v5693_v57, %v5566_v58  ;;  %v718_v8 = vrot.slane %v5693_v57, %v5574_v1 }
 0x214   :  { %4625 = vmatprep.subr.bf16.mxu0 %v5360_v5  ;;  %4666 = vmatprep.subr.bf16.mxu1 %v5362_v7  ;;  %v470_v5 = vld [vmem:[#allocation5 + $0xcf8] sm:$0xff]  ;;  %v722_v7 = vrot.slane %v5693_v57, %v5571_v63  ;;  %v5235_v9 = vcombine.low %v405_v52, %v437_v53  ;;  %v726_v10 = vrot.slane %v5693_v57, %v5577_v3 }
 0x215   :  { %v5237_v12 = vcombine.low %v406_v54, %v438_v55  ;;  %v5299_v28 = vcombine.low %v469_v61, %v501_v2  ;;  %v572_v55 = vld [vmem:[#allocation7 + $0x28] sm:$0xff] }
 0x217   :  { %4626 = vmatpush1.bf16.msra.mxu0 %v5359_v13  ;;  %4667 = vmatpush1.bf16.msra.mxu1 %v5361_v14  ;;  %v5300_v13 = vcombine.high %v469_v61, %v501_v2 }
 0x218   :  { %4693 = vmatprep.subr.bf16.mxu0 %v4916_v15  ;;  %4734 = vmatprep.subr.bf16.mxu1 %v4918_v16  ;;  %v5302_v15 = vcombine.high %v470_v5, %v502_v6  ;;  %v533_v16 = vld [vmem:[#allocation5 + $0xef0] sm:$0xff] }
 0x219   :  { %v5363_v39 = vcombine.low %v533_v16, %v565_v17 }
 0x21a   :  { %4644 = vmatmul.mubr.bf16.vlgmr.msra.gmra.mrb[56].mxu0 %v5533_v11  ;;  %4685 = vmatmul.mubr.bf16.vlgmr.msra.gmra.mrb[56].mxu1 %v5533_v11 }
 0x21b   :  { %4694 = vmatpush1.bf16.msra.mxu0 %v4915_v21  ;;  %4735 = vmatpush1.bf16.msra.mxu1 %v4917_v22  ;;  %v534_v21 = vld [vmem:[#allocation5 + $0xef8] sm:$0xff] }
 0x21c   :  { %4695 = vmatprep.subr.bf16.mxu0 %v4980_v23  ;;  %4736 = vmatprep.subr.bf16.mxu1 %v4982_v24  ;;  %v566_v22 = vld [vmem:[#allocation5 + $0xff8] sm:$0xff] }
 0x21d   :  { %4725 = vmatprep.mubr.bf16.mxu0 %v5473_v0  ;;  %4766 = vmatprep.mubr.bf16.mxu1 %v5473_v0  ;;  %v5174_v0 = vcombine.high %v342_v46, %v374_v47  ;;  %v5366_v38 = vcombine.high %v534_v21, %v566_v22  ;;  %v5365_v40 = vcombine.low %v534_v21, %v566_v22 }
 0x21f   :  { %4696 = vmatpush1.bf16.msra.mxu0 %v4979_v33  ;;  %4737 = vmatpush1.bf16.msra.mxu1 %v4981_v34 }
 0x220   :  { %4697 = vmatprep.subr.bf16.mxu0 %v5044_v35  ;;  %4738 = vmatprep.subr.bf16.mxu1 %v5046_v36  ;;  %v5301_v35 = vcombine.low %v470_v5, %v502_v6  ;;  %v5364_v36 = vcombine.high %v533_v16, %v565_v17  ;;  %v766_v16 = vrot.slane %v572_v55, %v5598_v30 }
 0x221   :  { %v774_v17 = vrot.slane %v572_v55, %v5601_v32 }
 0x223   :  { %4698 = vmatpush1.bf16.msra.mxu0 %v5043_v41  ;;  %4739 = vmatpush1.bf16.msra.mxu1 %v5045_v42  ;;  %v730_v41 = vrot.slane %v5693_v57, %v5592_v25  ;;  %v738_v42 = vrot.slane %v5693_v57, %v5595_v29 }
 0x224   :  { %4699 = vmatprep.subr.bf16.mxu0 %v5108_v51  ;;  %4740 = vmatprep.subr.bf16.mxu1 %v5110_v43  ;;  %v734_v51 = vrot.slane %v5693_v57, %v5598_v30  ;;  %v742_v43 = vrot.slane %v5693_v57, %v5601_v32  ;;  %v754_v57 = vrot.slane %v572_v55, %v5571_v63 }
 0x227   :  { %4700 = vmatpush1.bf16.msra.mxu0 %v5107_v48  ;;  %4741 = vmatpush1.bf16.msra.mxu1 %v5109_v49 }
 0x228   :  { %4701 = vmatprep.subr.bf16.mxu0 %v5172_v50  ;;  %4742 = vmatprep.subr.bf16.mxu1 %v5174_v0 }
 0x22b   :  { %4702 = vmatpush1.bf16.msra.mxu0 %v5171_v56  ;;  %4743 = vmatpush1.bf16.msra.mxu1 %v5173_v59  ;;  %v746_v56 = vrot.slane %v572_v55, %v5566_v58  ;;  %v750_v59 = vrot.slane %v572_v55, %v5574_v1 }
 0x22c   :  { %4703 = vmatprep.subr.bf16.mxu0 %v5236_v60  ;;  %4744 = vmatprep.subr.bf16.mxu1 %v5238_v62  ;;  %v758_v60 = vrot.slane %v572_v55, %v5577_v3 }
 0x22d   :  { %v4153_v14 = vpop.f32.mrb[32].mxu0  ;;  %v4194_v19 = vpop.f32.mrb[32].mxu1 }
 0x22e   :  { %v4154_v18 = vadd.f32 %v4153_v14, %v714_v4  ;;  %v4155_v20 = vpop.f32.mrb[33].mxu0  ;;  %v4195_v23 = vadd.f32 %v4194_v19, %v722_v7  ;;  %v4196_v26 = vpop.f32.mrb[33].mxu1  ;;  %v762_v14 = vrot.slane %v572_v55, %v5592_v25 }
 0x22f   :  { %v4156_v24 = vadd.f32 %v4155_v20, %v718_v8  ;;  %v4157_v27 = vpop.f32.mrb[34].mxu0  ;;  %4704 = vmatpush1.bf16.msra.mxu0 %v5235_v9  ;;  %v4197_v31 = vadd.f32 %v4196_v26, %v726_v10  ;;  %v4198_v33 = vpop.f32.mrb[34].mxu1  ;;  %4745 = vmatpush1.bf16.msra.mxu1 %v5237_v12 }
 0x230   :  { %4807 = vst [vmem:[#allocation8 + $0x100] sm:$0xff] %v4154_v18  ;;  %v4158_v34 = vpop.f32.mrb[35].mxu0  ;;  %4705 = vmatprep.subr.bf16.mxu0 %v5300_v13  ;;  %4809 = vst [vmem:[#allocation8 + $0x110] sm:$0xff] %v4195_v23  ;;  %v4199_v37 = vpop.f32.mrb[35].mxu1  ;;  %4746 = vmatprep.subr.bf16.mxu1 %v5302_v15  ;;  %v770_v15 = vrot.slane %v572_v55, %v5595_v29 }
 0x231   :  { %4808 = vst [vmem:[#allocation8 + $0x108] sm:$0xff] %v4156_v24  ;;  %4810 = vst [vmem:[#allocation8 + $0x118] sm:$0xff] %v4197_v31  ;;  %v573_v34 = vld [vmem:[#allocation7 + $0x30] sm:$0xff] }
 0x232   :  { %v782_v37 = vrot.slane %v573_v34, %v5574_v1 }
 0x233   :  { %4706 = vmatpush1.bf16.msra.mxu0 %v5299_v28  ;;  %4747 = vmatpush1.bf16.msra.mxu1 %v5301_v35  ;;  %v778_v35 = vrot.slane %v573_v34, %v5566_v58 }
 0x234   :  { %4707 = vmatprep.subr.bf16.mxu0 %v5364_v36  ;;  %4748 = vmatprep.subr.bf16.mxu1 %v5366_v38  ;;  %v786_v36 = vrot.slane %v573_v34, %v5571_v63  ;;  %v790_v38 = vrot.slane %v573_v34, %v5577_v3 }
 0x237   :  { %4708 = vmatpush1.bf16.msra.mxu0 %v5363_v39  ;;  %4749 = vmatpush1.bf16.msra.mxu1 %v5365_v40 }
 0x23a   :  { %4726 = vmatmul.mubr.bf16.vlgmr.msra.gmra.mrb[60].mxu0 %v5533_v11  ;;  %4767 = vmatmul.mubr.bf16.vlgmr.msra.gmra.mrb[60].mxu1 %v5533_v11 }
 0x24d   :  { %v4235_v44 = vpop.f32.mrb[36].mxu0  ;;  %v4276_v46 = vpop.f32.mrb[36].mxu1 }
 0x24e   :  { %v4236_v45 = vadd.f32 %v4235_v44, %v730_v41  ;;  %v4237_v47 = vpop.f32.mrb[37].mxu0  ;;  %v4277_v48 = vadd.f32 %v4276_v46, %v738_v42  ;;  %v4278_v50 = vpop.f32.mrb[37].mxu1 }
 0x24f   :  { %v4238_v49 = vadd.f32 %v4237_v47, %v734_v51  ;;  %v4239_v11 = vpop.f32.mrb[38].mxu0  ;;  %v4279_v0 = vadd.f32 %v4278_v50, %v742_v43  ;;  %v4280_v52 = vpop.f32.mrb[38].mxu1  ;;  %v794_v50 = vrot.slane %v573_v34, %v5592_v25 }
 0x250   :  { %4811 = vst [vmem:[#allocation8 + $0x120] sm:$0xff] %v4236_v45  ;;  %v4240_v53 = vpop.f32.mrb[39].mxu0  ;;  %4813 = vst [vmem:[#allocation8 + $0x130] sm:$0xff] %v4277_v48  ;;  %v4281_v54 = vpop.f32.mrb[39].mxu1  ;;  %v802_v11 = vrot.slane %v573_v34, %v5595_v29  ;;  %v806_v52 = vrot.slane %v573_v34, %v5601_v32 }
 0x251   :  { %4812 = vst [vmem:[#allocation8 + $0x128] sm:$0xff] %v4238_v49  ;;  %4814 = vst [vmem:[#allocation8 + $0x138] sm:$0xff] %v4279_v0  ;;  %v798_v0 = vrot.slane %v573_v34, %v5598_v30 }
 0x26d   :  { %v4317_v62 = vpop.f32.mrb[40].mxu0  ;;  %v4358_v2 = vpop.f32.mrb[40].mxu1 }
 0x26e   :  { %v4318_v61 = vadd.f32 %v4317_v62, %v746_v56  ;;  %v4319_v4 = vpop.f32.mrb[41].mxu0  ;;  %v4359_v5 = vadd.f32 %v4358_v2, %v754_v57  ;;  %v4360_v7 = vpop.f32.mrb[41].mxu1 }
 0x26f   :  { %v4320_v6 = vadd.f32 %v4319_v4, %v750_v59  ;;  %v4321_v8 = vpop.f32.mrb[42].mxu0  ;;  %v4361_v9 = vadd.f32 %v4360_v7, %v758_v60  ;;  %v4362_v10 = vpop.f32.mrb[42].mxu1 }
 0x270   :  { %4815 = vst [vmem:[#allocation8 + $0x140] sm:$0xff] %v4318_v61  ;;  %v4322_v12 = vpop.f32.mrb[43].mxu0  ;;  %4817 = vst [vmem:[#allocation8 + $0x150] sm:$0xff] %v4359_v5  ;;  %v4363_v13 = vpop.f32.mrb[43].mxu1 }
 0x271   :  { %4816 = vst [vmem:[#allocation8 + $0x148] sm:$0xff] %v4320_v6  ;;  %4818 = vst [vmem:[#allocation8 + $0x158] sm:$0xff] %v4361_v9  ;;  %v574_v6 = vld [vmem:[#allocation7 + $0x38] sm:$0xff] }
 0x272   :  { %v810_v7 = vrot.slane %v574_v6, %v5566_v58  ;;  %v818_v8 = vrot.slane %v574_v6, %v5571_v63  ;;  %v814_v9 = vrot.slane %v574_v6, %v5574_v1  ;;  %v822_v10 = vrot.slane %v574_v6, %v5577_v3 }
 0x273   :  { %v826_v63 = vrot.slane %v574_v6, %v5592_v25  ;;  %v834_v1 = vrot.slane %v574_v6, %v5595_v29  ;;  %v830_v3 = vrot.slane %v574_v6, %v5598_v30 }
 0x28d   :  { %v4399_v18 = vpop.f32.mrb[44].mxu0  ;;  %v4440_v20 = vpop.f32.mrb[44].mxu1 }
 0x28e   :  { %v4400_v19 = vadd.f32 %v4399_v18, %v762_v14  ;;  %v4401_v21 = vpop.f32.mrb[45].mxu0  ;;  %v4441_v22 = vadd.f32 %v4440_v20, %v770_v15  ;;  %v4442_v24 = vpop.f32.mrb[45].mxu1 }
 0x28f   :  { %v4402_v23 = vadd.f32 %v4401_v21, %v766_v16  ;;  %v4403_v26 = vpop.f32.mrb[46].mxu0  ;;  %v4443_v27 = vadd.f32 %v4442_v24, %v774_v17  ;;  %v4444_v28 = vpop.f32.mrb[46].mxu1 }
 0x290   :  { %4819 = vst [vmem:[#allocation8 + $0x160] sm:$0xff] %v4400_v19  ;;  %v4404_v31 = vpop.f32.mrb[47].mxu0  ;;  %4821 = vst [vmem:[#allocation8 + $0x170] sm:$0xff] %v4441_v22  ;;  %v4445_v33 = vpop.f32.mrb[47].mxu1 }
 0x291   :  { %4820 = vst [vmem:[#allocation8 + $0x168] sm:$0xff] %v4402_v23  ;;  %4822 = vst [vmem:[#allocation8 + $0x178] sm:$0xff] %v4443_v27  ;;  %v838_v23 = vrot.slane %v574_v6, %v5601_v32 }
 0x2ad   :  { %v4481_v39 = vpop.f32.mrb[48].mxu0  ;;  %v4522_v41 = vpop.f32.mrb[48].mxu1 }
 0x2ae   :  { %v4482_v40 = vadd.f32 %v4481_v39, %v778_v35  ;;  %v4483_v42 = vpop.f32.mrb[49].mxu0  ;;  %v4523_v51 = vadd.f32 %v4522_v41, %v786_v36  ;;  %v4524_v44 = vpop.f32.mrb[49].mxu1 }
 0x2af   :  { %v4484_v43 = vadd.f32 %v4483_v42, %v782_v37  ;;  %v4485_v45 = vpop.f32.mrb[50].mxu0  ;;  %v4525_v46 = vadd.f32 %v4524_v44, %v790_v38  ;;  %v4526_v47 = vpop.f32.mrb[50].mxu1 }
 0x2b0   :  { %4823 = vst [vmem:[#allocation8 + $0x180] sm:$0xff] %v4482_v40  ;;  %v4486_v48 = vpop.f32.mrb[51].mxu0  ;;  %4825 = vst [vmem:[#allocation8 + $0x190] sm:$0xff] %v4523_v51  ;;  %v4527_v49 = vpop.f32.mrb[51].mxu1 }
 0x2b1   :  { %4824 = vst [vmem:[#allocation8 + $0x188] sm:$0xff] %v4484_v43  ;;  %4826 = vst [vmem:[#allocation8 + $0x198] sm:$0xff] %v4525_v46 }
 0x2cd   :  { %v4563_v53 = vpop.f32.mrb[52].mxu0  ;;  %v4604_v55 = vpop.f32.mrb[52].mxu1 }
 0x2ce   :  { %v4564_v54 = vadd.f32 %v4563_v53, %v794_v50  ;;  %v4565_v56 = vpop.f32.mrb[53].mxu0  ;;  %v4605_v57 = vadd.f32 %v4604_v55, %v802_v11  ;;  %v4606_v60 = vpop.f32.mrb[53].mxu1 }
 0x2cf   :  { %v4566_v59 = vadd.f32 %v4565_v56, %v798_v0  ;;  %v4567_v62 = vpop.f32.mrb[54].mxu0  ;;  %v4607_v61 = vadd.f32 %v4606_v60, %v806_v52  ;;  %v4608_v2 = vpop.f32.mrb[54].mxu1 }
 0x2d0   :  { %4827 = vst [vmem:[#allocation8 + $0x1a0] sm:$0xff] %v4564_v54  ;;  %v4568_v4 = vpop.f32.mrb[55].mxu0  ;;  %4829 = vst [vmem:[#allocation8 + $0x1b0] sm:$0xff] %v4605_v57  ;;  %v4609_v5 = vpop.f32.mrb[55].mxu1 }
 0x2d1   :  { %4828 = vst [vmem:[#allocation8 + $0x1a8] sm:$0xff] %v4566_v59  ;;  %4830 = vst [vmem:[#allocation8 + $0x1b8] sm:$0xff] %v4607_v61 }
 0x2ed   :  { %v4645_v12 = vpop.f32.mrb[56].mxu0  ;;  %v4686_v14 = vpop.f32.mrb[56].mxu1 }
 0x2ee   :  { %v4646_v13 = vadd.f32 %v4645_v12, %v810_v7  ;;  %v4647_v15 = vpop.f32.mrb[57].mxu0  ;;  %v4687_v16 = vadd.f32 %v4686_v14, %v818_v8  ;;  %v4688_v18 = vpop.f32.mrb[57].mxu1 }
 0x2ef   :  { %v4648_v17 = vadd.f32 %v4647_v15, %v814_v9  ;;  %v4649_v19 = vpop.f32.mrb[58].mxu0  ;;  %v4689_v20 = vadd.f32 %v4688_v18, %v822_v10  ;;  %v4690_v21 = vpop.f32.mrb[58].mxu1 }
 0x2f0   :  { %4831 = vst [vmem:[#allocation8 + $0x1c0] sm:$0xff] %v4646_v13  ;;  %v4650_v22 = vpop.f32.mrb[59].mxu0  ;;  %4833 = vst [vmem:[#allocation8 + $0x1d0] sm:$0xff] %v4687_v16  ;;  %v4691_v58 = vpop.f32.mrb[59].mxu1 }
 0x2f1   :  { %4832 = vst [vmem:[#allocation8 + $0x1c8] sm:$0xff] %v4648_v17  ;;  %4834 = vst [vmem:[#allocation8 + $0x1d8] sm:$0xff] %v4689_v20 }
 0x30d   :  { %v4727_v24 = vpop.f32.mrb[60].mxu0  ;;  %v4768_v27 = vpop.f32.mrb[60].mxu1 }
 0x30e   :  { %v4728_v26 = vadd.f32 %v4727_v24, %v826_v63  ;;  %v4729_v28 = vpop.f32.mrb[61].mxu0  ;;  %v4769_v31 = vadd.f32 %v4768_v27, %v834_v1  ;;  %v4770_v34 = vpop.f32.mrb[61].mxu1 }
 0x30f   :  { %v4730_v33 = vadd.f32 %v4729_v28, %v830_v3  ;;  %v4731_v35 = vpop.f32.mrb[62].mxu0  ;;  %v4771_v36 = vadd.f32 %v4770_v34, %v838_v23  ;;  %v4772_v37 = vpop.f32.mrb[62].mxu1 }
 0x310   :  { %4835 = vst [vmem:[#allocation8 + $0x1e0] sm:$0xff] %v4728_v26  ;;  %v4732_v25 = vpop.f32.mrb[63].mxu0  ;;  %4837 = vst [vmem:[#allocation8 + $0x1f0] sm:$0xff] %v4769_v31  ;;  %v4773_v29 = vpop.f32.mrb[63].mxu1 }
 0x311   :  { %4836 = vst [vmem:[#allocation8 + $0x1e8] sm:$0xff] %v4730_v33  ;;  %4838 = vst [vmem:[#allocation8 + $0x1f8] sm:$0xff] %v4771_v36 }
 0x312   :  { %5451 = shalt.err (!%p5448_p0)
}
 0x313   :  { %s5452_s25 = scalar_lea.hbm %s5752_s3, 8192 }
 0x314   :  { %p5453_p1 = scmp.ne.s32.totalorder %s5752_s3, %s5452_s25  ;;  %p5456_p2 = scmp.lt.u32.totalorder %s5452_s25, %s5752_s3 }
 0x316   :  { %p5458_p3 = pnand %p5456_p2, %p5453_p1 }
 0x318   :  { %5461 = shalt.err (!%p5458_p3)
}
 0x319   :  { %4848 = dma.vmem_to_hbm [thread:$0]  %s4846_s21, 8192, %s5752_s3, [#allocation4]  }
 0x31a   :  { %5466 = dma.done.wait [#allocation4], 8192  }
 0x31b   :  { %5467 = vsyncadd [#allocation4], 4294959104 }
 0x31c   :  { %4852 = vsyncpa [#allocation3], 1 }
 0x31d   :  { %4853 = vsyncpa [#allocation6], 1 }
 0x31e   :  { %4854 = vsyncpa [#allocation4], 1 }

</bundles_post_ra>
